<compile_context>
chip_gen: v6e
topology: v6e:2x2x1
jax: 0.10.0
libtpu: 0.0.40
codegen_flags: <defaults>
</compile_context>

<pallas_src>
import functools

import jax
import jax.numpy as jnp
from jax.experimental import pallas as pl
from jax.experimental.pallas import tpu as pltpu


def _conv_bn_relu_kernel(x_ref, w_ref, b_ref, o_ref, xpad_ref, *, KH, KW, ph, pw):
    """One image per grid step.

    x_ref:    (1, H, W, Cin)        unpadded NHWC input tile (VMEM)
    w_ref:    (KH*KW*Cin, Cout)     BN-scale-folded weights, rows (kh, kw, cin)
    b_ref:    (Cout, 1)             folded BN bias (includes conv bias)
    o_ref:    (1, Cout, H*W)        lane-dense output (free reshape to NCHW)
    xpad_ref: (Hp, Wp, Cin)         VMEM scratch for in-kernel zero padding
    """
    _, H, W, Cin = x_ref.shape
    Cout = o_ref.shape[1]

    # In-kernel zero padding (no padded tensor materialized in HBM).
    # Note: re-zero every grid step -- with "parallel" semantics each core has
    # its own scratch, so a program_id==0 guard would be incorrect.
    xpad_ref[...] = jnp.zeros_like(xpad_ref)
    xpad_ref[ph:ph + H, pw:pw + W, :] = x_ref[0]

    # im2col: build one (H*W, KH*KW*Cin) patch matrix from KH*KW static slices
    # and do a single MXU matmul (K = KH*KW*Cin) instead of KH*KW matmuls of
    # contraction depth Cin.
    cols = [
        xpad_ref[kh:kh + H, kw:kw + W, :].reshape(H * W, Cin)
        for kh in range(KH) for kw in range(KW)
    ]
    patches = jnp.concatenate(cols, axis=1)                     # (H*W, KH*KW*Cin)

    acc = jnp.dot(patches, w_ref[...],
                  preferred_element_type=jnp.float32)           # (H*W, Cout)

    # Epilogue on the lane-dense transposed layout (Cout, H*W): 2 dense vregs
    # instead of 32 x 8/128-lane vregs.  BN scale already folded into weights.
    y = acc.T + b_ref[...]                                      # (Cout, H*W)
    o_ref[0] = jnp.maximum(y, 0.0).astype(o_ref.dtype)          # ReLU


def conv2d_bn_relu(x_nchw, weight_oihw, conv_bias, gamma, beta,
                   running_mean, running_var, eps=1e-5):
    """Pallas implementation of Conv2D.forward (conv + BN(eval) + ReLU).

    x_nchw:      (N, Cin, H, W)  float32
    weight_oihw: (Cout, Cin, KH, KW)
    returns:     (N, Cout, H, W)  (padding = k // 2, stride 1, groups 1)
    """
    N, Cin, H, W = x_nchw.shape
    Cout, _, KH, KW = weight_oihw.shape
    assert KH % 2 == 1 and KW % 2 == 1, "autopad same-size output needs odd k"
    ph, pw = KH // 2, KW // 2
    Hp, Wp = H + 2 * ph, W + 2 * pw

    # --- glue (plain JAX, all tiny per-channel tensors except one transpose) ---
    # BN (eval mode) folding: scale goes into the conv weights, bias stays.
    inv_std = jax.lax.rsqrt(running_var + eps)
    scale = gamma * inv_std                                     # (Cout,)
    bias = ((conv_bias - running_mean) * scale + beta)          # (Cout,)
    bias = bias.reshape(Cout, 1).astype(jnp.float32)

    w_scaled = weight_oihw * scale.reshape(Cout, 1, 1, 1)       # fold BN scale
    # (Cout, Cin, KH, KW) -> (KH, KW, Cin, Cout) -> (KH*KW*Cin, Cout)
    # Row order (kh, kw, cin) matches the im2col column order in the kernel.
    w_mat = jnp.transpose(w_scaled, (2, 3, 1, 0)).reshape(KH * KW * Cin, Cout)
    w_mat = w_mat.astype(jnp.float32)

    # NCHW -> NHWC for the kernel input (channels on the lane axis).  The
    # reverse output transpose is NOT needed: the kernel emits (N, Cout, H*W)
    # which reshapes to NCHW for free.
    x_nhwc = jnp.transpose(x_nchw, (0, 2, 3, 1))                # (N, H, W, Cin)

    kernel = functools.partial(_conv_bn_relu_kernel, KH=KH, KW=KW, ph=ph, pw=pw)

    out = pl.pallas_call(
        kernel,
        out_shape=jax.ShapeDtypeStruct((N, Cout, H * W), x_nchw.dtype),
        grid_spec=pltpu.PrefetchScalarGridSpec(
            num_scalar_prefetch=0,
            grid=(N,),
            in_specs=[
                pl.BlockSpec((1, H, W, Cin), lambda n: (n, 0, 0, 0)),
                pl.BlockSpec((KH * KW * Cin, Cout), lambda n: (0, 0)),
                pl.BlockSpec((Cout, 1), lambda n: (0, 0)),
            ],
            out_specs=pl.BlockSpec((1, Cout, H * W), lambda n: (n, 0, 0)),
            scratch_shapes=[pltpu.VMEM((Hp, Wp, Cin), jnp.float32)],
        ),
        compiler_params=pltpu.CompilerParams(
            dimension_semantics=("parallel",)),
    )(x_nhwc, w_mat, bias)

    return out.reshape(N, Cout, H, W)                           # free reshape


def _reference(x_nchw, weight_oihw, conv_bias, gamma, beta,
               running_mean, running_var, eps=1e-5):
    """Pure-JAX reference (same semantics) for a correctness check."""
    KH = weight_oihw.shape[2]
    p = KH // 2
    y = jax.lax.conv_general_dilated(
        x_nchw, weight_oihw, window_strides=(1, 1),
        padding=((p, p), (p, p)),
        dimension_numbers=("NCHW", "OIHW", "NCHW"))
    y = y + conv_bias.reshape(1, -1, 1, 1)
    y = (y - running_mean.reshape(1, -1, 1, 1)) / jnp.sqrt(
        running_var.reshape(1, -1, 1, 1) + eps)
    y = y * gamma.reshape(1, -1, 1, 1) + beta.reshape(1, -1, 1, 1)
    return jnp.maximum(y, 0.0)


if __name__ == "__main__":
    # Small shapes consistent with the module: Conv2D(inc=4, ouc=8, kernel_size=3)
    N, Cin, H, W = 2, 4, 16, 16
    Cout, K = 8, 3

    key = jax.random.PRNGKey(0)
    kx, kw, kb, kg, kbe, krm, krv = jax.random.split(key, 7)

    x = jax.random.normal(kx, (N, Cin, H, W), jnp.float32)
    weight = jax.random.normal(kw, (Cout, Cin, K, K), jnp.float32) * 0.1
    conv_bias = jax.random.normal(kb, (Cout,), jnp.float32) * 0.1
    gamma = 1.0 + 0.1 * jax.random.normal(kg, (Cout,), jnp.float32)
    beta = 0.1 * jax.random.normal(kbe, (Cout,), jnp.float32)
    running_mean = 0.1 * jax.random.normal(krm, (Cout,), jnp.float32)
    running_var = jnp.abs(1.0 + 0.1 * jax.random.normal(krv, (Cout,), jnp.float32))

    run = jax.jit(conv2d_bn_relu)
    out = run(x, weight, conv_bias, gamma, beta, running_mean, running_var)
    out = jax.block_until_ready(out)

    ref = _reference(x, weight, conv_bias, gamma, beta, running_mean, running_var)
    assert out.shape == (N, Cout, H, W)
    assert jnp.allclose(out, ref, atol=1e-4, rtol=1e-4)

    print("KERNEL_OK")
</pallas_src>

<mosaic_0001>
module attributes {stable_mosaic.version = 11 : i64} {
  func.func @_conv_bn_relu_kernel(%arg0: i32, %arg1: memref<1x16x16x4xf32, #tpu.memory_space<vmem>>, %arg2: memref<36x8xf32, #tpu.memory_space<vmem>>, %arg3: memref<8x1xf32, #tpu.memory_space<vmem>>, %arg4: memref<1x8x256xf32, #tpu.memory_space<vmem>>, %arg5: memref<18x18x4xf32, #tpu.memory_space<vmem>>) attributes {dimension_semantics = [#tpu.dimension_semantics<parallel>], iteration_bounds = array<i64: 2>, scalar_prefetch = 0 : i64, scratch_operands = 1 : i64, tpu.core_type = #tpu.core_type<tc>, window_params = [{transform_indices = @transform_0, window_bounds = array<i64: 1, 16, 16, 4>}, {pipeline_mode = #tpu.pipeline_mode<synchronous>, transform_indices = @transform_1, window_bounds = array<i64: 36, 8>}, {pipeline_mode = #tpu.pipeline_mode<synchronous>, transform_indices = @transform_2, window_bounds = array<i64: 8, 1>}, {transform_indices = @transform_3, window_bounds = array<i64: 1, 8, 256>}]} {
    %cst = arith.constant 0.000000e+00 : f32
    %0 = vector.broadcast %cst : f32 to vector<18x18x4xf32>
    %c0 = arith.constant 0 : index
    %c0_0 = arith.constant 0 : index
    %c0_1 = arith.constant 0 : index
    %1 = vector.load %arg5[%c0, %c0_0, %c0_1] : memref<18x18x4xf32, #tpu.memory_space<vmem>>, vector<18x18x4xf32>
    tpu.vector_store %arg5[%c0, %c0_0, %c0_1], %0 {strides = array<i32>} : memref<18x18x4xf32, #tpu.memory_space<vmem>>, vector<18x18x4xf32>,
    %c0_2 = arith.constant 0 : index
    %c0_3 = arith.constant 0 : index
    %c0_4 = arith.constant 0 : index
    %c0_5 = arith.constant 0 : index
    %2 = vector.load %arg1[%c0_2, %c0_3, %c0_4, %c0_5] : memref<1x16x16x4xf32, #tpu.memory_space<vmem>>, vector<1x16x16x4xf32>
    %3 = vector.shape_cast %2 : vector<1x16x16x4xf32> to vector<16x16x4xf32>
    %c1 = arith.constant 1 : index
    %c1_6 = arith.constant 1 : index
    %c0_7 = arith.constant 0 : index
    %4 = vector.load %arg5[%c1, %c1_6, %c0_7] : memref<18x18x4xf32, #tpu.memory_space<vmem>>, vector<16x16x4xf32>
    tpu.vector_store %arg5[%c1, %c1_6, %c0_7], %3 {strides = array<i32>} : memref<18x18x4xf32, #tpu.memory_space<vmem>>, vector<16x16x4xf32>,
    %c0_8 = arith.constant 0 : index
    %c0_9 = arith.constant 0 : index
    %c0_10 = arith.constant 0 : index
    %5 = vector.load %arg5[%c0_8, %c0_9, %c0_10] : memref<18x18x4xf32, #tpu.memory_space<vmem>>, vector<16x16x4xf32>
    %6 = vector.shape_cast %5 : vector<16x16x4xf32> to vector<256x4xf32>
    %c0_11 = arith.constant 0 : index
    %c1_12 = arith.constant 1 : index
    %c0_13 = arith.constant 0 : index
    %7 = vector.load %arg5[%c0_11, %c1_12, %c0_13] : memref<18x18x4xf32, #tpu.memory_space<vmem>>, vector<16x16x4xf32>
    %8 = vector.shape_cast %7 : vector<16x16x4xf32> to vector<256x4xf32>
    %c0_14 = arith.constant 0 : index
    %c2 = arith.constant 2 : index
    %c0_15 = arith.constant 0 : index
    %9 = vector.load %arg5[%c0_14, %c2, %c0_15] : memref<18x18x4xf32, #tpu.memory_space<vmem>>, vector<16x16x4xf32>
    %10 = vector.shape_cast %9 : vector<16x16x4xf32> to vector<256x4xf32>
    %c1_16 = arith.constant 1 : index
    %c0_17 = arith.constant 0 : index
    %c0_18 = arith.constant 0 : index
    %11 = vector.load %arg5[%c1_16, %c0_17, %c0_18] : memref<18x18x4xf32, #tpu.memory_space<vmem>>, vector<16x16x4xf32>
    %12 = vector.shape_cast %11 : vector<16x16x4xf32> to vector<256x4xf32>
    %c1_19 = arith.constant 1 : index
    %c1_20 = arith.constant 1 : index
    %c0_21 = arith.constant 0 : index
    %13 = vector.load %arg5[%c1_19, %c1_20, %c0_21] : memref<18x18x4xf32, #tpu.memory_space<vmem>>, vector<16x16x4xf32>
    %14 = vector.shape_cast %13 : vector<16x16x4xf32> to vector<256x4xf32>
    %c1_22 = arith.constant 1 : index
    %c2_23 = arith.constant 2 : index
    %c0_24 = arith.constant 0 : index
    %15 = vector.load %arg5[%c1_22, %c2_23, %c0_24] : memref<18x18x4xf32, #tpu.memory_space<vmem>>, vector<16x16x4xf32>
    %16 = vector.shape_cast %15 : vector<16x16x4xf32> to vector<256x4xf32>
    %c2_25 = arith.constant 2 : index
    %c0_26 = arith.constant 0 : index
    %c0_27 = arith.constant 0 : index
    %17 = vector.load %arg5[%c2_25, %c0_26, %c0_27] : memref<18x18x4xf32, #tpu.memory_space<vmem>>, vector<16x16x4xf32>
    %18 = vector.shape_cast %17 : vector<16x16x4xf32> to vector<256x4xf32>
    %c2_28 = arith.constant 2 : index
    %c1_29 = arith.constant 1 : index
    %c0_30 = arith.constant 0 : index
    %19 = vector.load %arg5[%c2_28, %c1_29, %c0_30] : memref<18x18x4xf32, #tpu.memory_space<vmem>>, vector<16x16x4xf32>
    %20 = vector.shape_cast %19 : vector<16x16x4xf32> to vector<256x4xf32>
    %c2_31 = arith.constant 2 : index
    %c2_32 = arith.constant 2 : index
    %c0_33 = arith.constant 0 : index
    %21 = vector.load %arg5[%c2_31, %c2_32, %c0_33] : memref<18x18x4xf32, #tpu.memory_space<vmem>>, vector<16x16x4xf32>
    %22 = vector.shape_cast %21 : vector<16x16x4xf32> to vector<256x4xf32>
    %23 = tpu.concatenate %6, %8, %10, %12, %14, %16, %18, %20, %22 in 1 : vector<256x4xf32>, vector<256x4xf32>, vector<256x4xf32>, vector<256x4xf32>, vector<256x4xf32>, vector<256x4xf32>, vector<256x4xf32>, vector<256x4xf32>, vector<256x4xf32> -> vector<256x36xf32>
    %c0_34 = arith.constant 0 : index
    %c0_35 = arith.constant 0 : index
    %24 = vector.load %arg2[%c0_34, %c0_35] : memref<36x8xf32, #tpu.memory_space<vmem>>, vector<36x8xf32>
    %cst_36 = arith.constant dense<0.000000e+00> : vector<256x8xf32>
    %25 = tpu.matmul %23, %24, %cst_36 {dimension_numbers = #tpu.dot_dimension_numbers<[1], [0], [0], [1], [0, 0, 1, 1], [], []>} : vector<256x36xf32>, vector<36x8xf32>, vector<256x8xf32> -> vector<256x8xf32>
    %26 = tpu.transpose %25, [1, 0] : vector<256x8xf32> -> vector<8x256xf32>
    %c0_37 = arith.constant 0 : index
    %c0_38 = arith.constant 0 : index
    %27 = vector.load %arg3[%c0_37, %c0_38] : memref<8x1xf32, #tpu.memory_space<vmem>>, vector<8x1xf32>
    %28 = vector.broadcast %27 : vector<8x1xf32> to vector<8x256xf32>
    %29 = arith.addf %26, %28 : vector<8x256xf32>
    %cst_39 = arith.constant 0.000000e+00 : f32
    %30 = vector.broadcast %cst_39 : f32 to vector<8x256xf32>
    %31 = arith.maximumf %29, %30 : vector<8x256xf32>
    %c0_40 = arith.constant 0 : index
    %c0_41 = arith.constant 0 : index
    %c0_42 = arith.constant 0 : index
    %32 = vector.load %arg4[%c0_40, %c0_41, %c0_42] : memref<1x8x256xf32, #tpu.memory_space<vmem>>, vector<1x8x256xf32>
    %33 = vector.shape_cast %32 : vector<1x8x256xf32> to vector<8x256xf32>
    %34 = vector.shape_cast %31 : vector<8x256xf32> to vector<1x8x256xf32>
    tpu.vector_store %arg4[%c0_40, %c0_41, %c0_42], %34 {strides = array<i32>} : memref<1x8x256xf32, #tpu.memory_space<vmem>>, vector<1x8x256xf32>,
    return
  }
  func.func @transform_0(%arg0: i32) -> (i32, i32, i32, i32) {
    %c0_i32 = arith.constant 0 : i32
    %c0_i32_0 = arith.constant 0 : i32
    %c0_i32_1 = arith.constant 0 : i32
    %c0_i32_2 = arith.constant 0 : i32
    return %arg0, %c0_i32, %c0_i32_0, %c0_i32_1 : i32, i32, i32, i32
  }
  func.func @transform_1(%arg0: i32) -> (i32, i32) {
    %c0_i32 = arith.constant 0 : i32
    %c0_i32_0 = arith.constant 0 : i32
    %c0_i32_1 = arith.constant 0 : i32
    return %c0_i32, %c0_i32_0 : i32, i32
  }
  func.func @transform_2(%arg0: i32) -> (i32, i32) {
    %c0_i32 = arith.constant 0 : i32
    %c0_i32_0 = arith.constant 0 : i32
    %c0_i32_1 = arith.constant 0 : i32
    return %c0_i32, %c0_i32_0 : i32, i32
  }
  func.func @transform_3(%arg0: i32) -> (i32, i32, i32) {
    %c0_i32 = arith.constant 0 : i32
    %c0_i32_0 = arith.constant 0 : i32
    %c0_i32_1 = arith.constant 0 : i32
    return %arg0, %c0_i32, %c0_i32_0 : i32, i32, i32
  }
}

</mosaic_0001>

<bundles_post_ra>
// kernel: conv2d_bn_relu.1
= control target key start
LH: loop header
LB: loop body
LE: loop exit
PB: predicated region body
PF: predicated region fallthrough
CT: control target
= control target key end

     0   :  { %s2562_s12 = smov 0   ;;  %s4039_s0 = inlined_call_operand.vmem [shape: f32[2,16,16,4], index: 0, kind: input, shape index: {}]   ;;  %s4040_s1 = inlined_call_operand.vmem [shape: f32[36,8], index: 1, kind: input, shape index: {}]   ;;  %s4041_s2 = inlined_call_operand.vmem [shape: f32[8,1], index: 2, kind: input, shape index: {}]   ;;  %s4042_s3 = inlined_call_operand.vmem [shape: f32[2,8,256], index: 3, kind: output, shape index: {}]  }
   0x1 LB: > { %s2330_s13 = sadd.s32 4294967295, %s2530_s12   ;;  %p2334_p0 = scmp.ge.s32.totalorder %s2530_s12, 1  ;;  %s2530_s12 = sphi %s2562_s12, %s13_s12  }
   0x2   : > { %p137_p1 = scmp.lt.s32.totalorder %s2530_s12, 3 }
   0x4   : > { %p138_p2 = pnand %p2334_p0, %p137_p1 }
   0x6   : > { %141 = sbr.rel (%p138_p2) target bundleno = 940 (0x3ac), region = 32 }
   0xb   : > { %vm171_vm0 = vcmask 31744   ;;  %vm174_vm1 = vcmask 25600   ;;  %p2572_p3 = scmp.lt.s32.totalorder %s2330_s13, 1  ;;  %v2532_v0 = vmov 0.0   ;;  %s2533_s19 = smov 4   ;;  %vm1970_vm2 = vcmask 1043456  }
   0xc   : > { %172 = vst.msk [vmem:[#allocation2] sm:$0xff] %vm171_vm0, %v2532_v0  ;;  %173 = vst.msk [vmem:[#allocation2 + $0x8] sm:$0xff] %vm171_vm0, %v2532_v0  ;;  %s2534_s20 = smov 8   ;;  %s2535_s21 = smov 12   ;;  %vm1637_vm3 = vcmask 64512   ;;  %vm1670_vm4 = vcmask 97280  }
   0xd   : > { %176 = vst.msk [vmem:[#allocation2 + $0x18] sm:$0xff] %vm171_vm0, %v2532_v0  ;;  %177 = vst.msk [vmem:[#allocation2 + $0x20] sm:$0xff] %vm171_vm0, %v2532_v0  ;;  %s4301_s13 = smov (!%p2572_p3, %s2330_s13), 1  ;;  %s2536_s22 = smov 16   ;;  %vm1703_vm5 = vcmask 130048   ;;  %vm1736_vm6 = vcmask 162816  }
   0xe   : > { %179 = vst.msk [vmem:[#allocation2 + $0x30] sm:$0xff] %vm171_vm0, %v2532_v0  ;;  %180 = vst.msk [vmem:[#allocation2 + $0x38] sm:$0xff] %vm171_vm0, %v2532_v0  ;;  %s2374_s15 = sshll.u32 %s4301_s13, 8  ;;  %s2537_s23 = smov 20   ;;  %vm1769_vm7 = vcmask 195584   ;;  %vm1802_vm8 = vcmask 228352  }
   0xf   : > { %182 = vst.msk [vmem:[#allocation2 + $0x48] sm:$0xff] %vm171_vm0, %v2532_v0  ;;  %183 = vst.msk [vmem:[#allocation2 + $0x50] sm:$0xff] %vm171_vm0, %v2532_v0  ;;  %s2640_s18 = scalar_lea.vmem %s4039_s0, %s2374_s15  ;;  %s2538_s28 = smov 24   ;;  %vm1835_vm9 = vcmask 261120   ;;  %vm1873_vm10 = vcmask 293888  }
  0x10   : > { %185 = vst.msk [vmem:[#allocation2 + $0x60] sm:$0xff] %vm171_vm0, %v2532_v0  ;;  %186 = vst.msk [vmem:[#allocation2 + $0x68] sm:$0xff] %vm171_vm0, %v2532_v0  ;;  %v227_v1 = vld [vmem:[%s2640_s18] sm:$0xff]  ;;  %v229_v2 = vld [vmem:[%s2640_s18 + $0x10] sm:$0xff]  ;;  %s2539_s8 = smov 28   ;;  %s2540_s9 = smov 32  }
  0x11   : > { %188 = vst.msk [vmem:[#allocation2 + $0x78] sm:$0xff] %vm171_vm0, %v2532_v0  ;;  %189 = vst.msk [vmem:[#allocation2 + $0x80] sm:$0xff] %vm171_vm0, %v2532_v0  ;;  %v228_v3 = vld [vmem:[%s2640_s18 + $0x8] sm:$0xff]  ;;  %v231_v4 = vld [vmem:[%s2640_s18 + $0x20] sm:$0xff]  ;;  %s2375_s14 = sshll.u32 %s4301_s13, 4 }
  0x12   : > { %191 = vst.msk [vmem:[#allocation2 + $0x90] sm:$0xff] %vm171_vm0, %v2532_v0  ;;  %192 = vst.msk [vmem:[#allocation2 + $0x98] sm:$0xff] %vm171_vm0, %v2532_v0  ;;  %v230_v5 = vld [vmem:[%s2640_s18 + $0x18] sm:$0xff]  ;;  %v233_v6 = vld [vmem:[%s2640_s18 + $0x30] sm:$0xff]  ;;  %s170_s17 = scalar_lea.vmem %s4042_s3, %s2375_s14 }
  0x13   : > { %194 = vst.msk [vmem:[#allocation2 + $0xa8] sm:$0xff] %vm171_vm0, %v2532_v0  ;;  %195 = vst.msk [vmem:[#allocation2 + $0xb0] sm:$0xff] %vm171_vm0, %v2532_v0  ;;  %v324_v7 = vld [vmem:[#allocation2 + $0x1] sm:$0xff]  ;;  %v234_v11 = vld [vmem:[%s2640_s18 + $0x38] sm:$0xff] }
  0x14   : > { %197 = vst.msk [vmem:[#allocation2 + $0xc0] sm:$0xff] %vm171_vm0, %v2532_v0  ;;  %198 = vst.msk [vmem:[#allocation2 + $0xc8] sm:$0xff] %vm171_vm0, %v2532_v0  ;;  %v232_v9 = vld [vmem:[%s2640_s18 + $0x28] sm:$0xff]  ;;  %613 = vrot.lane.b32.xlu0 %v324_v7, %s2533_s19  ;;  %v235_v10 = vld [vmem:[%s2640_s18 + $0x40] sm:$0xff] }
  0x15   : > { %200 = vst.msk [vmem:[#allocation2 + $0xd8] sm:$0xff] %vm171_vm0, %v2532_v0  ;;  %201 = vst.msk [vmem:[#allocation2 + $0xe0] sm:$0xff] %vm171_vm0, %v2532_v0  ;;  %v237_v12 = vld [vmem:[%s2640_s18 + $0x50] sm:$0xff]  ;;  %v236_v13 = vld [vmem:[%s2640_s18 + $0x48] sm:$0xff] }
  0x16   : > { %203 = vst.msk [vmem:[#allocation2 + $0xf0] sm:$0xff] %vm171_vm0, %v2532_v0  ;;  %204 = vst.msk [vmem:[#allocation2 + $0xf8] sm:$0xff] %vm171_vm0, %v2532_v0  ;;  %v239_v14 = vld [vmem:[%s2640_s18 + $0x60] sm:$0xff]  ;;  %v238_v15 = vld [vmem:[%s2640_s18 + $0x58] sm:$0xff] }
  0x17   : > { %206 = vst.msk [vmem:[#allocation2 + $0x108] sm:$0xff] %vm171_vm0, %v2532_v0  ;;  %207 = vst.msk [vmem:[#allocation2 + $0x110] sm:$0xff] %vm171_vm0, %v2532_v0  ;;  %v241_v16 = vld [vmem:[%s2640_s18 + $0x70] sm:$0xff]  ;;  %v240_v17 = vld [vmem:[%s2640_s18 + $0x68] sm:$0xff] }
  0x18   : > { %209 = vst.msk [vmem:[#allocation2 + $0x120] sm:$0xff] %vm171_vm0, %v2532_v0  ;;  %210 = vst.msk [vmem:[#allocation2 + $0x128] sm:$0xff] %vm171_vm0, %v2532_v0  ;;  %v243_v18 = vld [vmem:[%s2640_s18 + $0x80] sm:$0xff]  ;;  %v242_v19 = vld [vmem:[%s2640_s18 + $0x78] sm:$0xff] }
  0x19   : > { %212 = vst.msk [vmem:[#allocation2 + $0x138] sm:$0xff] %vm171_vm0, %v2532_v0  ;;  %213 = vst.msk [vmem:[#allocation2 + $0x140] sm:$0xff] %vm171_vm0, %v2532_v0  ;;  %v245_v20 = vld [vmem:[%s2640_s18 + $0x90] sm:$0xff]  ;;  %v244_v21 = vld [vmem:[%s2640_s18 + $0x88] sm:$0xff] }
  0x1a   : > { %215 = vst.msk [vmem:[#allocation2 + $0x150] sm:$0xff] %vm171_vm0, %v2532_v0  ;;  %216 = vst.msk [vmem:[#allocation2 + $0x158] sm:$0xff] %vm171_vm0, %v2532_v0  ;;  %v247_v22 = vld [vmem:[%s2640_s18 + $0xa0] sm:$0xff]  ;;  %v246_v23 = vld [vmem:[%s2640_s18 + $0x98] sm:$0xff] }
  0x1b   : > { %218 = vst.msk [vmem:[#allocation2 + $0x168] sm:$0xff] %vm171_vm0, %v2532_v0  ;;  %219 = vst.msk [vmem:[#allocation2 + $0x170] sm:$0xff] %vm171_vm0, %v2532_v0  ;;  %v249_v24 = vld [vmem:[%s2640_s18 + $0xb0] sm:$0xff]  ;;  %v248_v28 = vld [vmem:[%s2640_s18 + $0xa8] sm:$0xff] }
  0x1c   : > { %221 = vst.msk [vmem:[#allocation2 + $0x180] sm:$0xff] %vm171_vm0, %v2532_v0  ;;  %222 = vst.msk [vmem:[#allocation2 + $0x188] sm:$0xff] %vm171_vm0, %v2532_v0  ;;  %v251_v29 = vld [vmem:[%s2640_s18 + $0xc0] sm:$0xff]  ;;  %v250_v33 = vld [vmem:[%s2640_s18 + $0xb8] sm:$0xff] }
  0x1d   : > { %224 = vst.msk [vmem:[#allocation2 + $0x198] sm:$0xff] %vm171_vm0, %v2532_v0  ;;  %225 = vst.msk [vmem:[#allocation2 + $0x1a0] sm:$0xff] %vm171_vm0, %v2532_v0  ;;  %v253_v34 = vld [vmem:[%s2640_s18 + $0xd0] sm:$0xff]  ;;  %v252_v35 = vld [vmem:[%s2640_s18 + $0xc8] sm:$0xff] }
  0x1e   : > { %175 = vst.msk [vmem:[#allocation2 + $0x10] sm:$0x3] %vm174_vm1, %v2532_v0  ;;  %178 = vst.msk [vmem:[#allocation2 + $0x28] sm:$0x3] %vm174_vm1, %v2532_v0  ;;  %v255_v36 = vld [vmem:[%s2640_s18 + $0xe0] sm:$0xff]  ;;  %v254_v37 = vld [vmem:[%s2640_s18 + $0xd8] sm:$0xff] }
  0x1f   : > { %181 = vst.msk [vmem:[#allocation2 + $0x40] sm:$0x3] %vm174_vm1, %v2532_v0  ;;  %184 = vst.msk [vmem:[#allocation2 + $0x58] sm:$0x3] %vm174_vm1, %v2532_v0  ;;  %v256_v39 = vld [vmem:[%s2640_s18 + $0xe8] sm:$0xff]  ;;  %v257_v58 = vld [vmem:[%s2640_s18 + $0xf0] sm:$0xff] }
  0x20   : > { %187 = vst.msk [vmem:[#allocation2 + $0x70] sm:$0x3] %vm174_vm1, %v2532_v0  ;;  %190 = vst.msk [vmem:[#allocation2 + $0x88] sm:$0x3] %vm174_vm1, %v2532_v0  ;;  %v258_v62 = vld [vmem:[%s2640_s18 + $0xf8] sm:$0xff] }
  0x21   : > { %193 = vst.msk [vmem:[#allocation2 + $0xa0] sm:$0x3] %vm174_vm1, %v2532_v0  ;;  %196 = vst.msk [vmem:[#allocation2 + $0xb8] sm:$0x3] %vm174_vm1, %v2532_v0 }
  0x22   : > { %199 = vst.msk [vmem:[#allocation2 + $0xd0] sm:$0x3] %vm174_vm1, %v2532_v0  ;;  %202 = vst.msk [vmem:[#allocation2 + $0xe8] sm:$0x3] %vm174_vm1, %v2532_v0 }
  0x23   : > { %205 = vst.msk [vmem:[#allocation2 + $0x100] sm:$0x3] %vm174_vm1, %v2532_v0  ;;  %208 = vst.msk [vmem:[#allocation2 + $0x118] sm:$0x3] %vm174_vm1, %v2532_v0 }
  0x24   : > { %211 = vst.msk [vmem:[#allocation2 + $0x130] sm:$0x3] %vm174_vm1, %v2532_v0  ;;  %214 = vst.msk [vmem:[#allocation2 + $0x148] sm:$0x3] %vm174_vm1, %v2532_v0 }
  0x25   : > { %217 = vst.msk [vmem:[#allocation2 + $0x160] sm:$0x3] %vm174_vm1, %v2532_v0  ;;  %220 = vst.msk [vmem:[#allocation2 + $0x178] sm:$0x3] %vm174_vm1, %v2532_v0  ;;  %v325_v8 = vld [vmem:[#allocation2 + $0x9] sm:$0xff] }
  0x26   : > { %223 = vst.msk [vmem:[#allocation2 + $0x190] sm:$0x3] %vm174_vm1, %v2532_v0  ;;  %226 = vst.msk [vmem:[#allocation2 + $0x1a8] sm:$0x3] %vm174_vm1, %v2532_v0  ;;  %615 = vrot.lane.b32.xlu0 %v325_v8, %s2533_s19  ;;  %v356_v0 = vld [vmem:[#allocation2 + $0x2] sm:$0xff] }
  0x27   : > { %260 = vst.msk [vmem:[#allocation2 + $0x19] sm:$0xff] %vm171_vm0, %v227_v1  ;;  %262 = vst.msk [vmem:[#allocation2 + $0x31] sm:$0xff] %vm171_vm0, %v229_v2 }
  0x28   : > { %261 = vst.msk [vmem:[#allocation2 + $0x21] sm:$0xff] %vm171_vm0, %v228_v3  ;;  %264 = vst.msk [vmem:[#allocation2 + $0x49] sm:$0xff] %vm171_vm0, %v231_v4  ;;  %v357_v3 = vld [vmem:[#allocation2 + $0xa] sm:$0xff] }
  0x29   : > { %263 = vst.msk [vmem:[#allocation2 + $0x39] sm:$0xff] %vm171_vm0, %v230_v5  ;;  %266 = vst.msk [vmem:[#allocation2 + $0x61] sm:$0xff] %vm171_vm0, %v233_v6 }
  0x2a   : > { %265 = vst.msk [vmem:[#allocation2 + $0x51] sm:$0xff] %vm171_vm0, %v232_v9  ;;  %268 = vst.msk [vmem:[#allocation2 + $0x79] sm:$0xff] %vm171_vm0, %v235_v10 }
  0x2b   : > { %267 = vst.msk [vmem:[#allocation2 + $0x69] sm:$0xff] %vm171_vm0, %v234_v11  ;;  %270 = vst.msk [vmem:[#allocation2 + $0x91] sm:$0xff] %vm171_vm0, %v237_v12 }
  0x2c   : > { %269 = vst.msk [vmem:[#allocation2 + $0x81] sm:$0xff] %vm171_vm0, %v236_v13  ;;  %272 = vst.msk [vmem:[#allocation2 + $0xa9] sm:$0xff] %vm171_vm0, %v239_v14 }
  0x2d   : > { %271 = vst.msk [vmem:[#allocation2 + $0x99] sm:$0xff] %vm171_vm0, %v238_v15  ;;  %274 = vst.msk [vmem:[#allocation2 + $0xc1] sm:$0xff] %vm171_vm0, %v241_v16 }
  0x2e   : > { %273 = vst.msk [vmem:[#allocation2 + $0xb1] sm:$0xff] %vm171_vm0, %v240_v17  ;;  %276 = vst.msk [vmem:[#allocation2 + $0xd9] sm:$0xff] %vm171_vm0, %v243_v18  ;;  %v2685_v25 = vld [vmem:[#allocation2 + $0x19] sm:$0xff]  ;;  %v2687_v26 = vld [vmem:[#allocation2 + $0x31] sm:$0xff] }
  0x2f   : > { %275 = vst.msk [vmem:[#allocation2 + $0xc9] sm:$0xff] %vm171_vm0, %v242_v19  ;;  %278 = vst.msk [vmem:[#allocation2 + $0xf1] sm:$0xff] %vm171_vm0, %v245_v20  ;;  %617 = vrot.lane.b32.xlu1 %v2685_v25, %s2533_s19  ;;  %v2694_v27 = vld [vmem:[#allocation2 + $0x21] sm:$0xff]  ;;  %621 = vrot.lane.b32.xlu0 %v2687_v26, %s2533_s19  ;;  %v2702_v30 = vld [vmem:[#allocation2 + $0x49] sm:$0xff] }
  0x30   : > { %277 = vst.msk [vmem:[#allocation2 + $0xe1] sm:$0xff] %vm171_vm0, %v244_v21  ;;  %280 = vst.msk [vmem:[#allocation2 + $0x109] sm:$0xff] %vm171_vm0, %v247_v22  ;;  %v2706_v31 = vld [vmem:[#allocation2 + $0x39] sm:$0xff]  ;;  %v2710_v32 = vld [vmem:[#allocation2 + $0x61] sm:$0xff] }
  0x31   : > { %279 = vst.msk [vmem:[#allocation2 + $0xf9] sm:$0xff] %vm171_vm0, %v246_v23  ;;  %282 = vst.msk [vmem:[#allocation2 + $0x121] sm:$0xff] %vm171_vm0, %v249_v24  ;;  %v2722_v38 = vld [vmem:[#allocation2 + $0x51] sm:$0xff]  ;;  %v2730_v40 = vld [vmem:[#allocation2 + $0x79] sm:$0xff] }
  0x32   : > { %281 = vst.msk [vmem:[#allocation2 + $0x111] sm:$0xff] %vm171_vm0, %v248_v28  ;;  %284 = vst.msk [vmem:[#allocation2 + $0x139] sm:$0xff] %vm171_vm0, %v251_v29  ;;  %v2734_v41 = vld [vmem:[#allocation2 + $0x69] sm:$0xff]  ;;  %v2738_v42 = vld [vmem:[#allocation2 + $0x91] sm:$0xff] }
  0x33   : > { %619 = vrot.lane.b32.xlu1 %v2694_v27, %s2533_s19  ;;  %625 = vrot.lane.b32.xlu0 %v2702_v30, %s2533_s19  ;;  %283 = vst.msk [vmem:[#allocation2 + $0x129] sm:$0xff] %vm171_vm0, %v250_v33  ;;  %286 = vst.msk [vmem:[#allocation2 + $0x151] sm:$0xff] %vm171_vm0, %v253_v34  ;;  %v2742_v43 = vld [vmem:[#allocation2 + $0x81] sm:$0xff]  ;;  %v2746_v44 = vld [vmem:[#allocation2 + $0xa9] sm:$0xff] }
  0x34   : > { %285 = vst.msk [vmem:[#allocation2 + $0x141] sm:$0xff] %vm171_vm0, %v252_v35  ;;  %288 = vst.msk [vmem:[#allocation2 + $0x169] sm:$0xff] %vm171_vm0, %v255_v36  ;;  %v2750_v45 = vld [vmem:[#allocation2 + $0x99] sm:$0xff]  ;;  %v2754_v46 = vld [vmem:[#allocation2 + $0xc1] sm:$0xff] }
  0x35   : > { %287 = vst.msk [vmem:[#allocation2 + $0x159] sm:$0xff] %vm171_vm0, %v254_v37  ;;  %289 = vst.msk [vmem:[#allocation2 + $0x171] sm:$0xff] %vm171_vm0, %v256_v39  ;;  %v2758_v47 = vld [vmem:[#allocation2 + $0xb1] sm:$0xff]  ;;  %v2762_v48 = vld [vmem:[#allocation2 + $0xd9] sm:$0xff] }
  0x36   : > { %v2766_v49 = vld [vmem:[#allocation2 + $0xc9] sm:$0xff]  ;;  %v2770_v50 = vld [vmem:[#allocation2 + $0xf1] sm:$0xff]  ;;  %290 = vst.msk [vmem:[#allocation2 + $0x181] sm:$0xff] %vm171_vm0, %v257_v58  ;;  %291 = vst.msk [vmem:[#allocation2 + $0x189] sm:$0xff] %vm171_vm0, %v258_v62 }
  0x37   : > { %623 = vrot.lane.b32.xlu1 %v2706_v31, %s2533_s19  ;;  %629 = vrot.lane.b32.xlu0 %v2710_v32, %s2533_s19  ;;  %v2774_v51 = vld [vmem:[#allocation2 + $0xe1] sm:$0xff]  ;;  %v2778_v52 = vld [vmem:[#allocation2 + $0x109] sm:$0xff]  ;;  %v2833_v4 = vld [vmem:[#allocation2 + $0x32] sm:$0xff] }
  0x38   : > { %v2782_v53 = vld [vmem:[#allocation2 + $0xf9] sm:$0xff]  ;;  %v2786_v54 = vld [vmem:[#allocation2 + $0x121] sm:$0xff]  ;;  %v2840_v6 = vld [vmem:[#allocation2 + $0x4a] sm:$0xff] }
  0x39   : > { %v2790_v55 = vld [vmem:[#allocation2 + $0x111] sm:$0xff]  ;;  %v2794_v56 = vld [vmem:[#allocation2 + $0x139] sm:$0xff]  ;;  %v2836_v5 = vld [vmem:[#allocation2 + $0x22] sm:$0xff] }
  0x3a   : > { %v2798_v57 = vld [vmem:[#allocation2 + $0x129] sm:$0xff]  ;;  %v2804_v59 = vld [vmem:[#allocation2 + $0x151] sm:$0xff]  ;;  %v2827_v2 = vld [vmem:[#allocation2 + $0x1a] sm:$0xff] }
  0x3b   : > { %627 = vrot.lane.b32.xlu1 %v2722_v38, %s2533_s19  ;;  %633 = vrot.lane.b32.xlu0 %v2730_v40, %s2533_s19  ;;  %v2808_v60 = vld [vmem:[#allocation2 + $0x141] sm:$0xff]  ;;  %v2812_v61 = vld [vmem:[#allocation2 + $0x169] sm:$0xff]  ;;  %v2852_v9 = vld [vmem:[#allocation2 + $0x52] sm:$0xff] }
  0x3c   : > { %v2818_v63 = vld [vmem:[#allocation2 + $0x159] sm:$0xff]  ;;  %v2824_v1 = vld [vmem:[#allocation2 + $0x171] sm:$0xff]  ;;  %v2848_v8 = vld [vmem:[#allocation2 + $0x62] sm:$0xff] }
  0x3d   : > { %v2844_v7 = vld [vmem:[#allocation2 + $0x3a] sm:$0xff]  ;;  %v2860_v11 = vld [vmem:[#allocation2 + $0x6a] sm:$0xff]  ;;  %v2864_v12 = vld [vmem:[#allocation2 + $0x92] sm:$0xff] }
  0x3e   : > { %v2856_v10 = vld [vmem:[#allocation2 + $0x7a] sm:$0xff]  ;;  %v2868_v13 = vld [vmem:[#allocation2 + $0x82] sm:$0xff]  ;;  %v2872_v14 = vld [vmem:[#allocation2 + $0xaa] sm:$0xff] }
  0x3f   : > { %631 = vrot.lane.b32.xlu1 %v2734_v41, %s2533_s19  ;;  %637 = vrot.lane.b32.xlu0 %v2738_v42, %s2533_s19  ;;  %v2876_v15 = vld [vmem:[#allocation2 + $0x9a] sm:$0xff]  ;;  %v2880_v16 = vld [vmem:[#allocation2 + $0xc2] sm:$0xff]  ;;  %v2884_v17 = vld [vmem:[#allocation2 + $0xb2] sm:$0xff] }
  0x40   : > { %v2888_v18 = vld [vmem:[#allocation2 + $0xda] sm:$0xff]  ;;  %v373_v19 = vld [vmem:[#allocation2 + $0xca] sm:$0xff]  ;;  %v2894_v20 = vld [vmem:[#allocation2 + $0xf2] sm:$0xff] }
  0x41   : > { %v2897_v21 = vld [vmem:[#allocation2 + $0xe2] sm:$0xff]  ;;  %v2901_v22 = vld [vmem:[#allocation2 + $0x10a] sm:$0xff]  ;;  %v2905_v23 = vld [vmem:[#allocation2 + $0xfa] sm:$0xff] }
  0x42   : > { %4062 = vst [vmem:[#allocation3_spill] sm:$0xff] %v2901_v22  ;;  %v380_v24 = vld [vmem:[#allocation2 + $0x122] sm:$0xff]  ;;  %v2911_v28 = vld [vmem:[#allocation2 + $0x112] sm:$0xff]  ;;  %v382_v29 = vld [vmem:[#allocation2 + $0x13a] sm:$0xff] }
  0x43   : > { %635 = vrot.lane.b32.xlu1 %v2742_v43, %s2533_s19  ;;  %641 = vrot.lane.b32.xlu0 %v2746_v44, %s2533_s19  ;;  %4063 = vst [vmem:[#allocation4_spill] sm:$0xff] %v2911_v28  ;;  %v381_v34 = vld [vmem:[#allocation2 + $0x12a] sm:$0xff]  ;;  %v384_v35 = vld [vmem:[#allocation2 + $0x152] sm:$0xff]  ;;  %v383_v37 = vld [vmem:[#allocation2 + $0x142] sm:$0xff] }
  0x44   : > { %v386_v58 = vld [vmem:[#allocation2 + $0x16a] sm:$0xff] }
  0x47   : > { %639 = vrot.lane.b32.xlu1 %v2750_v45, %s2533_s19  ;;  %645 = vrot.lane.b32.xlu0 %v2754_v46, %s2533_s19 }
  0x4b   : > { %643 = vrot.lane.b32.xlu1 %v2758_v47, %s2533_s19  ;;  %649 = vrot.lane.b32.xlu0 %v2762_v48, %s2533_s19 }
  0x4f   : > { %647 = vrot.lane.b32.xlu1 %v2766_v49, %s2533_s19  ;;  %653 = vrot.lane.b32.xlu0 %v2770_v50, %s2533_s19 }
  0x53   : > { %651 = vrot.lane.b32.xlu1 %v2774_v51, %s2533_s19  ;;  %657 = vrot.lane.b32.xlu0 %v2778_v52, %s2533_s19 }
  0x57   : > { %655 = vrot.lane.b32.xlu1 %v2782_v53, %s2533_s19  ;;  %661 = vrot.lane.b32.xlu0 %v2786_v54, %s2533_s19 }
  0x5b   : > { %659 = vrot.lane.b32.xlu1 %v2790_v55, %s2533_s19  ;;  %665 = vrot.lane.b32.xlu0 %v2794_v56, %s2533_s19 }
  0x5f   : > { %663 = vrot.lane.b32.xlu1 %v2798_v57, %s2533_s19  ;;  %669 = vrot.lane.b32.xlu0 %v2804_v59, %s2533_s19 }
  0x63   : > { %667 = vrot.lane.b32.xlu1 %v2808_v60, %s2533_s19  ;;  %673 = vrot.lane.b32.xlu0 %v2812_v61, %s2533_s19 }
  0x67   : > { %671 = vrot.lane.b32.xlu1 %v2818_v63, %s2533_s19  ;;  %741 = vrot.lane.b32.xlu0 %v356_v0, %s2534_s20  ;;  %v385_v0 = vld [vmem:[#allocation2 + $0x15a] sm:$0xff] }
  0x6b   : > { %675 = vrot.lane.b32.xlu1 %v2824_v1, %s2533_s19  ;;  %745 = vrot.lane.b32.xlu0 %v2827_v2, %s2534_s20 }
  0x6f   : > { %743 = vrot.lane.b32.xlu1 %v357_v3, %s2534_s20  ;;  %749 = vrot.lane.b32.xlu0 %v2833_v4, %s2534_s20 }
  0x73   : > { %747 = vrot.lane.b32.xlu1 %v2836_v5, %s2534_s20  ;;  %753 = vrot.lane.b32.xlu0 %v2840_v6, %s2534_s20 }
  0x77   : > { %751 = vrot.lane.b32.xlu1 %v2844_v7, %s2534_s20  ;;  %757 = vrot.lane.b32.xlu0 %v2848_v8, %s2534_s20 }
  0x7b   : > { %755 = vrot.lane.b32.xlu1 %v2852_v9, %s2534_s20  ;;  %761 = vrot.lane.b32.xlu0 %v2856_v10, %s2534_s20 }
  0x7f   : > { %759 = vrot.lane.b32.xlu1 %v2860_v11, %s2534_s20  ;;  %765 = vrot.lane.b32.xlu0 %v2864_v12, %s2534_s20 }
  0x83   : > { %763 = vrot.lane.b32.xlu1 %v2868_v13, %s2534_s20  ;;  %769 = vrot.lane.b32.xlu0 %v2872_v14, %s2534_s20 }
  0x86   : > { %v2914_v33 = vpop.permute.xlu0 %613 }
  0x87   : > { %767 = vrot.lane.b32.xlu1 %v2876_v15, %s2534_s20  ;;  %773 = vrot.lane.b32.xlu0 %v2880_v16, %s2534_s20  ;;  %4064 = vst [vmem:[#allocation5_spill] sm:$0xff] %v2914_v33 }
  0x8b   : > { %771 = vrot.lane.b32.xlu1 %v2884_v17, %s2534_s20  ;;  %777 = vrot.lane.b32.xlu0 %v2888_v18, %s2534_s20 }
  0x8f   : > { %775 = vrot.lane.b32.xlu1 %v373_v19, %s2534_s20  ;;  %781 = vrot.lane.b32.xlu0 %v2894_v20, %s2534_s20 }
  0x93   : > { %779 = vrot.lane.b32.xlu1 %v2897_v21, %s2534_s20  ;;  %785 = vrot.lane.b32.xlu0 %v2901_v22, %s2534_s20 }
  0x97   : > { %783 = vrot.lane.b32.xlu1 %v2905_v23, %s2534_s20  ;;  %789 = vrot.lane.b32.xlu0 %v380_v24, %s2534_s20  ;;  %v2934_v24 = vld [vmem:[#allocation2 + $0x18] sm:$0xff] }
  0x98   : > { %v2919_v36 = vpop.permute.xlu0 %615  ;;  %4070 = vst [vmem:[#allocation11_spill] sm:$0xff] %v2934_v24 }
  0x99   : > { %4065 = vst [vmem:[#allocation6_spill] sm:$0xff] %v2919_v36 }
  0x9b   : > { %787 = vrot.lane.b32.xlu1 %v2911_v28, %s2534_s20  ;;  %793 = vrot.lane.b32.xlu0 %v382_v29, %s2534_s20  ;;  %v387_v29 = vld [vmem:[#allocation2 + $0x172] sm:$0xff]  ;;  %v3063_v28 = vld [vmem:[#allocation2 + $0x128] sm:$0xff] }
  0x9c   : > { %4107 = vst [vmem:[#allocation48_spill] sm:$0xff] %v3063_v28 }
  0x9f   : > { %791 = vrot.lane.b32.xlu1 %v381_v34, %s2534_s20  ;;  %797 = vrot.lane.b32.xlu0 %v384_v35, %s2534_s20 }
  0xa1   : > { %v2923_v39 = vpop.permute.xlu1 %617  ;;  %v2925_v62 = vpop.permute.xlu0 %621 }
  0xa2   : > { %4066 = vst [vmem:[#allocation7_spill] sm:$0xff] %v2923_v39  ;;  %4067 = vst [vmem:[#allocation8_spill] sm:$0xff] %v2925_v62  ;;  %v2955_v62 = vld [vmem:[#allocation2 + $0x48] sm:$0xff] }
  0xa3   : > { %795 = vrot.lane.b32.xlu1 %v383_v37, %s2534_s20  ;;  %801 = vrot.lane.b32.xlu0 %v386_v58, %s2534_s20  ;;  %v2943_v37 = vld [vmem:[#allocation2 + $0x30] sm:$0xff] }
  0xa5   : > { %v2929_v3 = vpop.permute.xlu1 %619  ;;  %v2931_v19 = vpop.permute.xlu0 %625 }
  0xa6   : > { %4068 = vst [vmem:[#allocation9_spill] sm:$0xff] %v2929_v3  ;;  %4069 = vst [vmem:[#allocation10_spill] sm:$0xff] %v2931_v19 }
  0xa7   : > { %799 = vrot.lane.b32.xlu1 %v385_v0, %s2534_s20  ;;  %869 = vrot.lane.b32.xlu0 %v2934_v24, %s2535_s21  ;;  %v2949_v0 = vld [vmem:[#allocation2 + $0x20] sm:$0xff]  ;;  %v2982_v24 = vld [vmem:[#allocation2 + $0x68] sm:$0xff] }
  0xa8   : > { %4074 = vst [vmem:[#allocation15_spill] sm:$0xff] %v2949_v0  ;;  %4083 = vst [vmem:[#allocation24_spill] sm:$0xff] %v2982_v24 }
  0xa9   : > { %v2938_v34 = vpop.permute.xlu1 %623  ;;  %v2940_v35 = vpop.permute.xlu0 %629 }
  0xaa   : > { %4071 = vst [vmem:[#allocation12_spill] sm:$0xff] %v2938_v34  ;;  %4072 = vst [vmem:[#allocation13_spill] sm:$0xff] %v2940_v35  ;;  %v2961_v35 = vld [vmem:[#allocation2 + $0x38] sm:$0xff] }
  0xab   : > { %803 = vrot.lane.b32.xlu1 %v387_v29, %s2534_s20  ;;  %873 = vrot.lane.b32.xlu0 %v2943_v37, %s2535_s21 }
  0xad   : > { %v2947_v58 = vpop.permute.xlu1 %627  ;;  %v2951_v19 = vpop.permute.xlu0 %633 }
  0xae   : > { %4073 = vst [vmem:[#allocation14_spill] sm:$0xff] %v2947_v58  ;;  %4075 = vst [vmem:[#allocation16_spill] sm:$0xff] %v2951_v19  ;;  %v2967_v58 = vld [vmem:[#allocation2 + $0x60] sm:$0xff] }
  0xaf   : > { %871 = vrot.lane.b32.xlu1 %v2949_v0, %s2535_s21  ;;  %877 = vrot.lane.b32.xlu0 %v2955_v62, %s2535_s21  ;;  %4078 = vst [vmem:[#allocation19_spill] sm:$0xff] %v2967_v58  ;;  %v2973_v0 = vld [vmem:[#allocation2 + $0x50] sm:$0xff] }
  0xb0   : > { %4080 = vst [vmem:[#allocation21_spill] sm:$0xff] %v2973_v0 }
  0xb1   : > { %v2959_v29 = vpop.permute.xlu1 %631  ;;  %v2963_v34 = vpop.permute.xlu0 %637 }
  0xb2   : > { %4076 = vst [vmem:[#allocation17_spill] sm:$0xff] %v2959_v29  ;;  %4077 = vst [vmem:[#allocation18_spill] sm:$0xff] %v2963_v34  ;;  %v302_v29 = vld [vmem:[#allocation2 + $0x78] sm:$0xff] }
  0xb3   : > { %875 = vrot.lane.b32.xlu1 %v2961_v35, %s2535_s21  ;;  %881 = vrot.lane.b32.xlu0 %v2967_v58, %s2535_s21  ;;  %v305_v58 = vld [vmem:[#allocation2 + $0x98] sm:$0xff] }
  0xb5   : > { %v2971_v19 = vpop.permute.xlu1 %635  ;;  %v2975_v3 = vpop.permute.xlu0 %641 }
  0xb6   : > { %4079 = vst [vmem:[#allocation20_spill] sm:$0xff] %v2971_v19  ;;  %4081 = vst [vmem:[#allocation22_spill] sm:$0xff] %v2975_v3  ;;  %v304_v19 = vld [vmem:[#allocation2 + $0x90] sm:$0xff]  ;;  %v303_v3 = vld [vmem:[#allocation2 + $0x80] sm:$0xff] }
  0xb7   : > { %879 = vrot.lane.b32.xlu1 %v2973_v0, %s2535_s21  ;;  %885 = vrot.lane.b32.xlu0 %v302_v29, %s2535_s21  ;;  %v306_v29 = vld [vmem:[#allocation2 + $0xa8] sm:$0xff] }
  0xb9   : > { %v2980_v34 = vpop.permute.xlu1 %639  ;;  %v2984_v39 = vpop.permute.xlu0 %645 }
  0xba   : > { %4082 = vst [vmem:[#allocation23_spill] sm:$0xff] %v2980_v34  ;;  %4084 = vst [vmem:[#allocation25_spill] sm:$0xff] %v2984_v39 }
  0xbb   : > { %883 = vrot.lane.b32.xlu1 %v2982_v24, %s2535_s21  ;;  %889 = vrot.lane.b32.xlu0 %v304_v19, %s2535_s21  ;;  %v3000_v24 = vld [vmem:[#allocation2 + $0xc0] sm:$0xff] }
  0xbc   : > { %4089 = vst [vmem:[#allocation30_spill] sm:$0xff] %v3000_v24 }
  0xbd   : > { %v2989_v36 = vpop.permute.xlu1 %643  ;;  %v2991_v33 = vpop.permute.xlu0 %649 }
  0xbe   : > { %4085 = vst [vmem:[#allocation26_spill] sm:$0xff] %v2989_v36  ;;  %4086 = vst [vmem:[#allocation27_spill] sm:$0xff] %v2991_v33  ;;  %v307_v36 = vld [vmem:[#allocation2 + $0xb0] sm:$0xff] }
  0xbf   : > { %887 = vrot.lane.b32.xlu1 %v303_v3, %s2535_s21  ;;  %893 = vrot.lane.b32.xlu0 %v306_v29, %s2535_s21  ;;  %v3009_v3 = vld [vmem:[#allocation2 + $0xd8] sm:$0xff] }
  0xc0   : > { %4092 = vst [vmem:[#allocation33_spill] sm:$0xff] %v3009_v3 }
  0xc1   : > { %v2995_v34 = vpop.permute.xlu1 %647  ;;  %v2997_v39 = vpop.permute.xlu0 %653 }
  0xc2   : > { %4087 = vst [vmem:[#allocation28_spill] sm:$0xff] %v2995_v34  ;;  %4088 = vst [vmem:[#allocation29_spill] sm:$0xff] %v2997_v39 }
  0xc3   : > { %891 = vrot.lane.b32.xlu1 %v305_v58, %s2535_s21  ;;  %897 = vrot.lane.b32.xlu0 %v3000_v24, %s2535_s21  ;;  %v3015_v58 = vld [vmem:[#allocation2 + $0xc8] sm:$0xff] }
  0xc4   : > { %4094 = vst [vmem:[#allocation35_spill] sm:$0xff] %v3015_v58 }
  0xc5   : > { %v3004_v19 = vpop.permute.xlu1 %651  ;;  %v3006_v33 = vpop.permute.xlu0 %657 }
  0xc6   : > { %4090 = vst [vmem:[#allocation31_spill] sm:$0xff] %v3004_v19  ;;  %4091 = vst [vmem:[#allocation32_spill] sm:$0xff] %v3006_v33  ;;  %v3021_v19 = vld [vmem:[#allocation2 + $0xf0] sm:$0xff]  ;;  %v3027_v33 = vld [vmem:[#allocation2 + $0xe0] sm:$0xff] }
  0xc7   : > { %895 = vrot.lane.b32.xlu1 %v307_v36, %s2535_s21  ;;  %901 = vrot.lane.b32.xlu0 %v3009_v3, %s2535_s21  ;;  %4097 = vst [vmem:[#allocation38_spill] sm:$0xff] %v3027_v33  ;;  %v3039_v3 = vld [vmem:[#allocation2 + $0xf8] sm:$0xff] }
  0xc9   : > { %v3013_v29 = vpop.permute.xlu1 %655  ;;  %v3017_v39 = vpop.permute.xlu0 %661 }
  0xca   : > { %4093 = vst [vmem:[#allocation34_spill] sm:$0xff] %v3013_v29  ;;  %4095 = vst [vmem:[#allocation36_spill] sm:$0xff] %v3017_v39  ;;  %v3033_v29 = vld [vmem:[#allocation2 + $0x108] sm:$0xff] }
  0xcb   : > { %899 = vrot.lane.b32.xlu1 %v3015_v58, %s2535_s21  ;;  %905 = vrot.lane.b32.xlu0 %v3021_v19, %s2535_s21 }
  0xcd   : > { %v3025_v36 = vpop.permute.xlu1 %659  ;;  %v3029_v34 = vpop.permute.xlu0 %665 }
  0xce   : > { %4096 = vst [vmem:[#allocation37_spill] sm:$0xff] %v3025_v36  ;;  %4098 = vst [vmem:[#allocation39_spill] sm:$0xff] %v3029_v34  ;;  %v3045_v36 = vld [vmem:[#allocation2 + $0x120] sm:$0xff] }
  0xcf   : > { %903 = vrot.lane.b32.xlu1 %v3027_v33, %s2535_s21  ;;  %909 = vrot.lane.b32.xlu0 %v3033_v29, %s2535_s21  ;;  %4101 = vst [vmem:[#allocation42_spill] sm:$0xff] %v3045_v36  ;;  %v3051_v33 = vld [vmem:[#allocation2 + $0x110] sm:$0xff] }
  0xd0   : > { %4103 = vst [vmem:[#allocation44_spill] sm:$0xff] %v3051_v33 }
  0xd1   : > { %v3037_v39 = vpop.permute.xlu1 %663  ;;  %v3041_v58 = vpop.permute.xlu0 %669 }
  0xd2   : > { %4099 = vst [vmem:[#allocation40_spill] sm:$0xff] %v3037_v39  ;;  %4100 = vst [vmem:[#allocation41_spill] sm:$0xff] %v3041_v58  ;;  %v3057_v39 = vld [vmem:[#allocation2 + $0x138] sm:$0xff] }
  0xd3   : > { %907 = vrot.lane.b32.xlu1 %v3039_v3, %s2535_s21  ;;  %913 = vrot.lane.b32.xlu0 %v3045_v36, %s2535_s21  ;;  %4105 = vst [vmem:[#allocation46_spill] sm:$0xff] %v3057_v39  ;;  %v3075_v36 = vld [vmem:[#allocation2 + $0x140] sm:$0xff] }
  0xd5   : > { %v3049_v34 = vpop.permute.xlu1 %667  ;;  %v3053_v24 = vpop.permute.xlu0 %673 }
  0xd6   : > { %4102 = vst [vmem:[#allocation43_spill] sm:$0xff] %v3049_v34  ;;  %4104 = vst [vmem:[#allocation45_spill] sm:$0xff] %v3053_v24  ;;  %v3069_v34 = vld [vmem:[#allocation2 + $0x150] sm:$0xff] }
  0xd7   : > { %911 = vrot.lane.b32.xlu1 %v3051_v33, %s2535_s21  ;;  %917 = vrot.lane.b32.xlu0 %v3057_v39, %s2535_s21  ;;  %4109 = vst [vmem:[#allocation50_spill] sm:$0xff] %v3069_v34  ;;  %v3084_v39 = vld [vmem:[#allocation2 + $0x158] sm:$0xff] }
  0xd9   : > { %v3061_v58 = vpop.permute.xlu1 %671  ;;  %v3065_v22 = vpop.permute.xlu0 %741 }
  0xda   : > { %4106 = vst [vmem:[#allocation47_spill] sm:$0xff] %v3061_v58  ;;  %4108 = vst [vmem:[#allocation49_spill] sm:$0xff] %v3065_v22  ;;  %v322_v58 = vld [vmem:[#allocation2 + $0x168] sm:$0xff] }
  0xdb   : > { %915 = vrot.lane.b32.xlu1 %v3063_v28, %s2535_s21  ;;  %921 = vrot.lane.b32.xlu0 %v3069_v34, %s2535_s21  ;;  %v418_v28 = vld [vmem:[#allocation2 + $0x180] sm:$0xff] }
  0xdd   : > { %v3073_v24 = vpop.permute.xlu1 %675  ;;  %v3077_v0 = vpop.permute.xlu0 %745 }
  0xde   : > { %4110 = vst [vmem:[#allocation51_spill] sm:$0xff] %v3073_v24  ;;  %4111 = vst [vmem:[#allocation52_spill] sm:$0xff] %v3077_v0  ;;  %v323_v0 = vld [vmem:[#allocation2 + $0x170] sm:$0xff] }
  0xdf   : > { %919 = vrot.lane.b32.xlu1 %v3075_v36, %s2535_s21  ;;  %925 = vrot.lane.b32.xlu0 %v322_v58, %s2535_s21  ;;  %v419_v58 = vld [vmem:[#allocation2 + $0x188] sm:$0xff] }
  0xe1   : > { %v3082_v22 = vpop.permute.xlu1 %743  ;;  %v3086_v33 = vpop.permute.xlu0 %749 }
  0xe2   : > { %4112 = vst [vmem:[#allocation53_spill] sm:$0xff] %v3082_v22  ;;  %4113 = vst [vmem:[#allocation54_spill] sm:$0xff] %v3086_v33 }
  0xe3   : > { %923 = vrot.lane.b32.xlu1 %v3084_v39, %s2535_s21  ;;  %929 = vrot.lane.b32.xlu0 %v418_v28, %s2535_s21 }
  0xe5   : > { %v3091_v24 = vpop.permute.xlu1 %747  ;;  %v3093_v34 = vpop.permute.xlu0 %753 }
  0xe6   : > { %4114 = vst [vmem:[#allocation55_spill] sm:$0xff] %v3091_v24 }
  0xe7   : > { %927 = vrot.lane.b32.xlu1 %v323_v0, %s2535_s21  ;;  %997 = vrot.lane.b32.xlu0 %v2685_v25, %s2536_s22 }
  0xe9   : > { %v3098_v22 = vpop.permute.xlu1 %751  ;;  %v3100_v33 = vpop.permute.xlu0 %757 }
  0xea   : > { %4115 = vst [vmem:[#allocation56_spill] sm:$0xff] %v3100_v33  ;;  %v571_v33 = vld [vmem:[#allocation2 + $0x13a] sm:$0xff] }
  0xeb   : > { %931 = vrot.lane.b32.xlu1 %v419_v58, %s2535_s21  ;;  %1001 = vrot.lane.b32.xlu0 %v2687_v26, %s2536_s22 }
  0xed   : > { %v3105_v28 = vpop.permute.xlu1 %755  ;;  %v3107_v24 = vpop.permute.xlu0 %761 }
  0xee   : > { %4116 = vst [vmem:[#allocation57_spill] sm:$0xff] %v3105_v28  ;;  %4117 = vst [vmem:[#allocation58_spill] sm:$0xff] %v3107_v24  ;;  %v537_v24 = vld [vmem:[#allocation2 + $0x121] sm:$0xff] }
  0xef   : > { %999 = vrot.lane.b32.xlu1 %v2694_v27, %s2536_s22  ;;  %1005 = vrot.lane.b32.xlu0 %v2702_v30, %s2536_s22 }
  0xf1   : > { %v3113_v25 = vpop.permute.xlu1 %759  ;;  %v3115_v0 = vpop.permute.xlu0 %765 }
  0xf2   : > { %4118 = vst [vmem:[#allocation59_spill] sm:$0xff] %v3113_v25  ;;  %4119 = vst [vmem:[#allocation60_spill] sm:$0xff] %v3115_v0 }
  0xf3   : > { %1003 = vrot.lane.b32.xlu1 %v2706_v31, %s2536_s22  ;;  %1009 = vrot.lane.b32.xlu0 %v2710_v32, %s2536_s22 }
  0xf5   : > { %v3121_v26 = vpop.permute.xlu1 %763  ;;  %v3123_v58 = vpop.permute.xlu0 %769 }
  0xf6   : > { %4120 = vst [vmem:[#allocation61_spill] sm:$0xff] %v3121_v26  ;;  %4121 = vst [vmem:[#allocation62_spill] sm:$0xff] %v3123_v58  ;;  %v552_v26 = vld [vmem:[#allocation2 + $0x52] sm:$0xff] }
  0xf7   : > { %1007 = vrot.lane.b32.xlu1 %v2722_v38, %s2536_s22  ;;  %1013 = vrot.lane.b32.xlu0 %v2730_v40, %s2536_s22 }
  0xf9   : > { %v3129_v27 = vpop.permute.xlu1 %767  ;;  %v3131_v30 = vpop.permute.xlu0 %773 }
  0xfa   : > { %4122 = vst [vmem:[#allocation63_spill] sm:$0xff] %v3129_v27 }
  0xfb   : > { %1011 = vrot.lane.b32.xlu1 %v2734_v41, %s2536_s22  ;;  %1017 = vrot.lane.b32.xlu0 %v2738_v42, %s2536_s22 }
  0xfd   : > { %v3137_v31 = vpop.permute.xlu1 %771  ;;  %v3139_v32 = vpop.permute.xlu0 %777 }
  0xfe   : > { %4123 = vst [vmem:[#allocation64_spill] sm:$0xff] %v3137_v31 }
  0xff   : > { %1015 = vrot.lane.b32.xlu1 %v2742_v43, %s2536_s22  ;;  %1021 = vrot.lane.b32.xlu0 %v2746_v44, %s2536_s22 }
 0x101   : > { %v3145_v38 = vpop.permute.xlu1 %775  ;;  %v3147_v40 = vpop.permute.xlu0 %781 }
 0x103   : > { %1019 = vrot.lane.b32.xlu1 %v2750_v45, %s2536_s22  ;;  %1025 = vrot.lane.b32.xlu0 %v2754_v46, %s2536_s22 }
 0x105   : > { %v3153_v41 = vpop.permute.xlu1 %779  ;;  %v3155_v42 = vpop.permute.xlu0 %785 }
 0x107   : > { %1023 = vrot.lane.b32.xlu1 %v2758_v47, %s2536_s22  ;;  %1029 = vrot.lane.b32.xlu0 %v2762_v48, %s2536_s22 }
 0x109   : > { %v3161_v43 = vpop.permute.xlu1 %783  ;;  %v3163_v44 = vpop.permute.xlu0 %789 }
 0x10a   : > { %4124 = vst [vmem:[#allocation65_spill] sm:$0xff] %v3163_v44  ;;  %v556_v44 = vld [vmem:[#allocation2 + $0x82] sm:$0xff] }
 0x10b   : > { %1027 = vrot.lane.b32.xlu1 %v2766_v49, %s2536_s22  ;;  %1033 = vrot.lane.b32.xlu0 %v2770_v50, %s2536_s22 }
 0x10d   : > { %v3169_v45 = vpop.permute.xlu1 %787  ;;  %v3171_v46 = vpop.permute.xlu0 %793 }
 0x10e   : > { %4125 = vst [vmem:[#allocation66_spill] sm:$0xff] %v3169_v45  ;;  %4126 = vst [vmem:[#allocation67_spill] sm:$0xff] %v3171_v46  ;;  %v521_v46 = vld [vmem:[#allocation2 + $0x61] sm:$0xff]  ;;  %v542_v45 = vld [vmem:[#allocation2 + $0x159] sm:$0xff] }
 0x10f   : > { %1031 = vrot.lane.b32.xlu1 %v2774_v51, %s2536_s22  ;;  %1037 = vrot.lane.b32.xlu0 %v2778_v52, %s2536_s22 }
 0x111   : > { %v3177_v47 = vpop.permute.xlu1 %791  ;;  %v3179_v48 = vpop.permute.xlu0 %797 }
 0x112   : > { %4127 = vst [vmem:[#allocation68_spill] sm:$0xff] %v3177_v47  ;;  %4128 = vst [vmem:[#allocation69_spill] sm:$0xff] %v3179_v48 }
 0x113   : > { %1035 = vrot.lane.b32.xlu1 %v2782_v53, %s2536_s22  ;;  %1041 = vrot.lane.b32.xlu0 %v2786_v54, %s2536_s22 }
 0x115   : > { %v3185_v49 = vpop.permute.xlu1 %795  ;;  %v3187_v31 = vpop.permute.xlu0 %801 }
 0x116   : > { %4129 = vst [vmem:[#allocation70_spill] sm:$0xff] %v3185_v49  ;;  %4130 = vst [vmem:[#allocation71_spill] sm:$0xff] %v3187_v31 }
 0x117   : > { %1039 = vrot.lane.b32.xlu1 %v2790_v55, %s2536_s22  ;;  %1045 = vrot.lane.b32.xlu0 %v2794_v56, %s2536_s22  ;;  %v3211_v56 = vld [vmem:[#allocation2 + $0x181] sm:$0xff] }
 0x119   : > { %v3193_v51 = vpop.permute.xlu1 %799  ;;  %v3195_v52 = vpop.permute.xlu0 %869 }
 0x11a   : > { %4131 = vst [vmem:[#allocation72_spill] sm:$0xff] %v3193_v51 }
 0x11b   : > { %1043 = vrot.lane.b32.xlu1 %v2798_v57, %s2536_s22  ;;  %1049 = vrot.lane.b32.xlu0 %v2804_v59, %s2536_s22 }
 0x11d   : > { %v3201_v54 = vpop.permute.xlu1 %803  ;;  %v3203_v58 = vpop.permute.xlu0 %873 }
 0x11e   : > { %4132 = vst [vmem:[#allocation73_spill] sm:$0xff] %v3201_v54 }
 0x11f   : > { %1047 = vrot.lane.b32.xlu1 %v2808_v60, %s2536_s22  ;;  %1053 = vrot.lane.b32.xlu0 %v2812_v61, %s2536_s22  ;;  %v3225_v60 = vld [vmem:[#allocation2 + $0x189] sm:$0xff] }
 0x121   : > { %v3209_v55 = vpop.permute.xlu1 %871  ;;  %v3213_v31 = vpop.permute.xlu0 %877 }
 0x123   : > { %1051 = vrot.lane.b32.xlu1 %v2818_v63, %s2536_s22  ;;  %1057 = vrot.lane.b32.xlu0 %v3211_v56, %s2536_s22 }
 0x125   : > { %v3219_v57 = vpop.permute.xlu1 %875  ;;  %v3221_v59 = vpop.permute.xlu0 %881 }
 0x126   : > { %4133 = vst [vmem:[#allocation74_spill] sm:$0xff] %v3221_v59  ;;  %v4195_v59 = vld [vmem:[#allocation6_spill] sm:$0xff] }
 0x127   : > { %1055 = vrot.lane.b32.xlu1 %v2824_v1, %s2536_s22  ;;  %1125 = vrot.lane.b32.xlu0 %v2827_v2, %s2537_s23 }
 0x129   : > { %v3229_v61 = vpop.permute.xlu1 %879  ;;  %v3231_v54 = vpop.permute.xlu0 %885 }
 0x12a   : > { %4134 = vst [vmem:[#allocation75_spill] sm:$0xff] %v3231_v54  ;;  %v540_v54 = vld [vmem:[#allocation2 + $0x141] sm:$0xff] }
 0x12b   : > { %1059 = vrot.lane.b32.xlu1 %v3225_v60, %s2536_s22  ;;  %1129 = vrot.lane.b32.xlu0 %v2833_v4, %s2537_s23 }
 0x12d   : > { %v3237_v63 = vpop.permute.xlu1 %883  ;;  %v3239_v51 = vpop.permute.xlu0 %889 }
 0x12e   : > { %4135 = vst [vmem:[#allocation76_spill] sm:$0xff] %v3237_v63  ;;  %4136 = vst [vmem:[#allocation77_spill] sm:$0xff] %v3239_v51  ;;  %v526_v63 = vld [vmem:[#allocation2 + $0x99] sm:$0xff] }
 0x12f   : > { %1127 = vrot.lane.b32.xlu1 %v2836_v5, %s2537_s23  ;;  %1133 = vrot.lane.b32.xlu0 %v2840_v6, %s2537_s23 }
 0x131   : > { %v3245_v1 = vpop.permute.xlu1 %887  ;;  %v3247_v2 = vpop.permute.xlu0 %893 }
 0x132   : > { %4137 = vst [vmem:[#allocation78_spill] sm:$0xff] %v3245_v1  ;;  %4138 = vst [vmem:[#allocation79_spill] sm:$0xff] %v3247_v2 }
 0x133   : > { %1131 = vrot.lane.b32.xlu1 %v2844_v7, %s2537_s23  ;;  %1137 = vrot.lane.b32.xlu0 %v2848_v8, %s2537_s23 }
 0x135   : > { %v3253_v27 = vpop.permute.xlu1 %891  ;;  %v3255_v0 = vpop.permute.xlu0 %897 }
 0x136   : > { %4139 = vst [vmem:[#allocation80_spill] sm:$0xff] %v3253_v27  ;;  %4140 = vst [vmem:[#allocation81_spill] sm:$0xff] %v3255_v0 }
 0x137   : > { %1135 = vrot.lane.b32.xlu1 %v2852_v9, %s2537_s23  ;;  %1141 = vrot.lane.b32.xlu0 %v2856_v10, %s2537_s23 }
 0x139   : > { %v3261_v5 = vpop.permute.xlu1 %895  ;;  %v3263_v6 = vpop.permute.xlu0 %901 }
 0x13a   : > { %4141 = vst [vmem:[#allocation82_spill] sm:$0xff] %v3261_v5  ;;  %v517_v5 = vld [vmem:[#allocation2 + $0x31] sm:$0xff] }
 0x13b   : > { %1139 = vrot.lane.b32.xlu1 %v2860_v11, %s2537_s23  ;;  %1145 = vrot.lane.b32.xlu0 %v2864_v12, %s2537_s23 }
 0x13d   : > { %v3269_v8 = vpop.permute.xlu1 %899  ;;  %v3271_v2 = vpop.permute.xlu0 %905 }
 0x13e   : > { %4142 = vst [vmem:[#allocation83_spill] sm:$0xff] %v3269_v8  ;;  %v1869_v8 = vld [vmem:[%s4040_s1 + $0x8] sm:$0xff] }
 0x13f   : > { %1143 = vrot.lane.b32.xlu1 %v2868_v13, %s2537_s23  ;;  %1149 = vrot.lane.b32.xlu0 %v2872_v14, %s2537_s23  ;;  %v1872_v14 = vld [vmem:[%s4040_s1 + $0x20] sm:$0xf] }
 0x140   : > { %2413 = vmatprep.subr.msk.mxu0 %vm1970_vm2, %v1872_v14  ;;  %2471 = vmatprep.subr.msk.mxu1 %vm1970_vm2, %v1872_v14 }
 0x141   : > { %v3277_v9 = vpop.permute.xlu1 %903  ;;  %v3279_v10 = vpop.permute.xlu0 %909  ;;  %2414 = vmatpush3.msk.msra.mxu0 %vm1970_vm2, %v1872_v14  ;;  %2476 = vmatpush3.msk.msra.mxu1 %vm1970_vm2, %v1872_v14  ;;  %v1868_v14 = vld [vmem:[%s4040_s1] sm:$0xff] }
 0x143   : > { %1147 = vrot.lane.b32.xlu1 %v2876_v15, %s2537_s23  ;;  %1153 = vrot.lane.b32.xlu0 %v2880_v16, %s2537_s23  ;;  %v1871_v16 = vld [vmem:[%s4040_s1 + $0x18] sm:$0xff] }
 0x144   : > { %2415 = vmatprep.subr.mxu0 %v1871_v16  ;;  %2472 = vmatprep.subr.mxu1 %v1871_v16 }
 0x145   : > { %v3285_v11 = vpop.permute.xlu1 %907  ;;  %v3287_v12 = vpop.permute.xlu0 %913  ;;  %2416 = vmatpush3.msra.mxu0 %v1871_v16  ;;  %2477 = vmatpush3.msra.mxu1 %v1871_v16  ;;  %v518_v16 = vld [vmem:[#allocation2 + $0x39] sm:$0xff] }
 0x147   : > { %1151 = vrot.lane.b32.xlu1 %v2884_v17, %s2537_s23  ;;  %1159 = vrot.lane.b32.xlu0 %v2897_v21, %s2537_s23  ;;  %v1870_v21 = vld [vmem:[%s4040_s1 + $0x10] sm:$0xff] }
 0x148   : > { %2417 = vmatprep.subr.mxu0 %v1870_v21  ;;  %2473 = vmatprep.subr.mxu1 %v1870_v21 }
 0x149   : > { %v3293_v13 = vpop.permute.xlu1 %911  ;;  %v3298_v15 = vpop.permute.xlu0 %917  ;;  %2418 = vmatpush3.msra.mxu0 %v1870_v21  ;;  %2478 = vmatpush3.msra.mxu1 %v1870_v21 }
 0x14a   : > { %4143 = vst [vmem:[#allocation84_spill] sm:$0xff] %v3298_v15  ;;  %2419 = vmatprep.subr.mxu0 %v1869_v8  ;;  %2474 = vmatprep.subr.mxu1 %v1869_v8 }
 0x14b   : > { %1157 = vrot.lane.b32.xlu1 %v2888_v18, %s2537_s23  ;;  %1285 = vrot.lane.b32.xlu0 %v3021_v19, %s2538_s28 }
 0x14c   : > { %2420 = vmatpush3.msra.mxu0 %v1869_v8  ;;  %2479 = vmatpush3.msra.mxu1 %v1869_v8 }
 0x14d   : > { %v3307_v17 = vpop.permute.xlu1 %915  ;;  %v3312_v18 = vpop.permute.xlu0 %921  ;;  %2421 = vmatprep.subr.mxu0 %v1868_v14  ;;  %2475 = vmatprep.subr.mxu1 %v1868_v14 }
 0x14e   : > { %4144 = vst [vmem:[#allocation85_spill] sm:$0xff] %v3307_v17  ;;  %4145 = vst [vmem:[#allocation86_spill] sm:$0xff] %v3312_v18  ;;  %2422 = vmatpush3.msra.mxu0 %v1868_v14  ;;  %2480 = vmatpush3.msra.mxu1 %v1868_v14 }
 0x14f   : > { %1253 = vrot.lane.b32.xlu1 %v2943_v37, %s2538_s28  ;;  %1287 = vrot.lane.b32.xlu0 %v3039_v3, %s2538_s28 }
 0x151   : > { %v3321_v0 = vpop.permute.xlu1 %919  ;;  %v3326_v37 = vpop.permute.xlu0 %925 }
 0x152   : > { %4146 = vst [vmem:[#allocation87_spill] sm:$0xff] %v3321_v0  ;;  %4147 = vst [vmem:[#allocation88_spill] sm:$0xff] %v3326_v37  ;;  %v538_v0 = vld [vmem:[#allocation2 + $0x129] sm:$0xff] }
 0x153   : > { %1255 = vrot.lane.b32.xlu1 %v2961_v35, %s2538_s28  ;;  %1413 = vrot.lane.b32.xlu0 %v2770_v50, %s2539_s8 }
 0x155   : > { %v3332_v3 = vpop.permute.xlu1 %923  ;;  %v3334_v48 = vpop.permute.xlu0 %929 }
 0x156   : > { %4148 = vst [vmem:[#allocation89_spill] sm:$0xff] %v3332_v3  ;;  %4149 = vst [vmem:[#allocation90_spill] sm:$0xff] %v3334_v48  ;;  %v536_v3 = vld [vmem:[#allocation2 + $0x111] sm:$0xff] }
 0x157   : > { %1381 = vrot.lane.b32.xlu1 %v517_v5, %s2539_s8  ;;  %1415 = vrot.lane.b32.xlu0 %v2782_v53, %s2539_s8 }
 0x159   : > { %v3339_v35 = vpop.permute.xlu1 %927  ;;  %v3341_v37 = vpop.permute.xlu0 %997 }
 0x15a   : > { %4150 = vst [vmem:[#allocation91_spill] sm:$0xff] %v3339_v35  ;;  %v519_v35 = vld [vmem:[#allocation2 + $0x49] sm:$0xff] }
 0x15b   : > { %1383 = vrot.lane.b32.xlu1 %v518_v16, %s2539_s8  ;;  %1541 = vrot.lane.b32.xlu0 %v2894_v20, %s2540_s9 }
 0x15d   : > { %v3346_v50 = vpop.permute.xlu1 %931  ;;  %v3348_v5 = vpop.permute.xlu0 %1001 }
 0x15e   : > { %4151 = vst [vmem:[#allocation92_spill] sm:$0xff] %v3346_v50  ;;  %v535_v50 = vld [vmem:[#allocation2 + $0x109] sm:$0xff] }
 0x15f   : > { %1509 = vrot.lane.b32.xlu1 %v2833_v4, %s2540_s9  ;;  %1511 = vrot.lane.b32.xlu0 %v2844_v7, %s2540_s9 }
 0x161   : > { %v3354_v53 = vpop.permute.xlu1 %999  ;;  %v3356_v8 = vpop.permute.xlu0 %1005 }
 0x163   : > { %1161 = vrot.lane.b32.xlu1 %v2894_v20, %s2537_s23  ;;  %1163 = vrot.lane.b32.xlu0 %v2905_v23, %s2537_s23  ;;  %v4154_v20 = vld [vmem:[#allocation44_spill] sm:$0xff] }
 0x165   : > { %v3362_v21 = vpop.permute.xlu1 %1003  ;;  %v3364_v14 = vpop.permute.xlu0 %1009 }
 0x166   : > { %4152 = vst [vmem:[#allocation93_spill] sm:$0xff] %v3364_v14  ;;  %v293_v14 = vld [vmem:[#allocation2 + $0x8] sm:$0xff] }
 0x167   : > { %1543 = vrot.lane.b32.xlu1 %v2905_v23, %s2540_s9  ;;  %1289 = vrot.lane.b32.xlu0 %v3033_v29, %s2538_s28  ;;  %v4157_v23 = vld [vmem:[#allocation21_spill] sm:$0xff] }
 0x169   : > { %v3370_v4 = vpop.permute.xlu1 %1007  ;;  %v3372_v7 = vpop.permute.xlu0 %1013 }
 0x16a   : > { %4153 = vst [vmem:[#allocation94_spill] sm:$0xff] %v3372_v7  ;;  %v554_v7 = vld [vmem:[#allocation2 + $0x6a] sm:$0xff] }
 0x16b   : > { %1257 = vrot.lane.b32.xlu1 %v2955_v62, %s2538_s28  ;;  %1291 = vrot.lane.b32.xlu0 %v4154_v20, %s2538_s28  ;;  %v520_v62 = vld [vmem:[#allocation2 + $0x51] sm:$0xff] }
 0x16d   : > { %v3378_v16 = vpop.permute.xlu1 %1011  ;;  %v3380_v48 = vpop.permute.xlu0 %1017 }
 0x16e   : > { %4155 = vst [vmem:[#allocation44_spill] sm:$0xff] %v3378_v16  ;;  %4156 = vst [vmem:[#allocation95_spill] sm:$0xff] %v3380_v48  ;;  %v4162_v48 = vld [vmem:[#allocation3_spill] sm:$0xff] }
 0x16f   : > { %1259 = vrot.lane.b32.xlu1 %v4157_v23, %s2538_s28  ;;  %1417 = vrot.lane.b32.xlu0 %v535_v50, %s2539_s8  ;;  %v551_v23 = vld [vmem:[#allocation2 + $0x4a] sm:$0xff] }
 0x171   : > { %v3385_v29 = vpop.permute.xlu1 %1015  ;;  %v3387_v49 = vpop.permute.xlu0 %1021 }
 0x172   : > { %4158 = vst [vmem:[#allocation21_spill] sm:$0xff] %v3385_v29  ;;  %4159 = vst [vmem:[#allocation96_spill] sm:$0xff] %v3387_v49  ;;  %v4168_v49 = vld [vmem:[#allocation19_spill] sm:$0xff]  ;;  %v569_v29 = vld [vmem:[#allocation2 + $0x122] sm:$0xff] }
 0x173   : > { %1385 = vrot.lane.b32.xlu1 %v519_v35, %s2539_s8  ;;  %1419 = vrot.lane.b32.xlu0 %v536_v3, %s2539_s8 }
 0x175   : > { %v3391_v20 = vpop.permute.xlu1 %1019  ;;  %v3393_v27 = vpop.permute.xlu0 %1025 }
 0x176   : > { %4160 = vst [vmem:[#allocation97_spill] sm:$0xff] %v3391_v20  ;;  %4161 = vst [vmem:[#allocation98_spill] sm:$0xff] %v3393_v27 }
 0x177   : > { %1387 = vrot.lane.b32.xlu1 %v520_v62, %s2539_s8  ;;  %1545 = vrot.lane.b32.xlu0 %v4162_v48, %s2540_s9  ;;  %v4165_v62 = vld [vmem:[#allocation4_spill] sm:$0xff] }
 0x179   : > { %v3398_v50 = vpop.permute.xlu1 %1023  ;;  %v3400_v51 = vpop.permute.xlu0 %1029 }
 0x17a   : > { %4163 = vst [vmem:[#allocation3_spill] sm:$0xff] %v3398_v50 }
 0x17b   : > { %1513 = vrot.lane.b32.xlu1 %v551_v23, %s2540_s9  ;;  %1515 = vrot.lane.b32.xlu0 %v552_v26, %s2540_s9  ;;  %v4166_v23 = vld [vmem:[#allocation42_spill] sm:$0xff] }
 0x17d   : > { %v3404_v3 = vpop.permute.xlu1 %1027  ;;  %v3406_v35 = vpop.permute.xlu0 %1033 }
 0x17e   : > { %4164 = vst [vmem:[#allocation99_spill] sm:$0xff] %v3404_v3 }
 0x17f   : > { %1165 = vrot.lane.b32.xlu1 %v4162_v48, %s2537_s23  ;;  %1167 = vrot.lane.b32.xlu0 %v4165_v62, %s2537_s23  ;;  %v4169_v48 = vld [vmem:[#allocation48_spill] sm:$0xff] }
 0x181   : > { %v3412_v27 = vpop.permute.xlu1 %1031  ;;  %v3414_v50 = vpop.permute.xlu0 %1037 }
 0x183   : > { %1547 = vrot.lane.b32.xlu1 %v4165_v62, %s2540_s9  ;;  %1293 = vrot.lane.b32.xlu0 %v4166_v23, %s2538_s28  ;;  %v4171_v62 = vld [vmem:[#allocation24_spill] sm:$0xff] }
 0x185   : > { %v3420_v26 = vpop.permute.xlu1 %1035  ;;  %v3422_v3 = vpop.permute.xlu0 %1041 }
 0x186   : > { %4167 = vst [vmem:[#allocation4_spill] sm:$0xff] %v3422_v3  ;;  %v1606_v3 = vsel %vm171_vm0, %v293_v14, %v4195_v59 }
 0x187   : > { %1261 = vrot.lane.b32.xlu1 %v4168_v49, %s2538_s28  ;;  %1295 = vrot.lane.b32.xlu0 %v4169_v48, %s2538_s28  ;;  %v522_v49 = vld [vmem:[#allocation2 + $0x69] sm:$0xff] }
 0x189   : > { %v3428_v20 = vpop.permute.xlu1 %1039  ;;  %v3430_v18 = vpop.permute.xlu0 %1045 }
 0x18a   : > { %4170 = vst [vmem:[#allocation42_spill] sm:$0xff] %v3430_v18 }
 0x18b   : > { %1263 = vrot.lane.b32.xlu1 %v4171_v62, %s2538_s28  ;;  %1421 = vrot.lane.b32.xlu0 %v537_v24, %s2539_s8  ;;  %v553_v62 = vld [vmem:[#allocation2 + $0x62] sm:$0xff] }
 0x18d   : > { %v3435_v23 = vpop.permute.xlu1 %1043  ;;  %v3437_v47 = vpop.permute.xlu0 %1049 }
 0x18e   : > { %4172 = vst [vmem:[#allocation19_spill] sm:$0xff] %v3435_v23  ;;  %4173 = vst [vmem:[#allocation48_spill] sm:$0xff] %v3437_v47 }
 0x18f   : > { %1389 = vrot.lane.b32.xlu1 %v521_v46, %s2539_s8  ;;  %1423 = vrot.lane.b32.xlu0 %v538_v0, %s2539_s8  ;;  %v475_v46 = vld [vmem:[#allocation2 + $0x12a] sm:$0xff] }
 0x191   : > { %v3441_v48 = vpop.permute.xlu1 %1047  ;;  %v3443_v1 = vpop.permute.xlu0 %1053 }
 0x192   : > { %4174 = vst [vmem:[#allocation24_spill] sm:$0xff] %v3441_v48  ;;  %4175 = vst [vmem:[#allocation100_spill] sm:$0xff] %v3443_v1 }
 0x193   : > { %1391 = vrot.lane.b32.xlu1 %v522_v49, %s2539_s8  ;;  %1549 = vrot.lane.b32.xlu0 %v569_v29, %s2540_s9 }
 0x195   : > { %v3447_v24 = vpop.permute.xlu1 %1051  ;;  %v3449_v25 = vpop.permute.xlu0 %1057 }
 0x196   : > { %4176 = vst [vmem:[#allocation101_spill] sm:$0xff] %v3447_v24  ;;  %4177 = vst [vmem:[#allocation102_spill] sm:$0xff] %v3449_v25  ;;  %v491_v25 = vld [vmem:[#allocation2 + $0x78] sm:$0xff]  ;;  %v492_v24 = vld [vmem:[#allocation2 + $0x80] sm:$0xff] }
 0x197   : > { %1517 = vrot.lane.b32.xlu1 %v553_v62, %s2540_s9  ;;  %1519 = vrot.lane.b32.xlu0 %v554_v7, %s2540_s9  ;;  %v4180_v62 = vld [vmem:[#allocation46_spill] sm:$0xff] }
 0x199   : > { %v3453_v0 = vpop.permute.xlu1 %1055  ;;  %v3455_v47 = vpop.permute.xlu0 %1125 }
 0x19a   : > { %4178 = vst [vmem:[#allocation103_spill] sm:$0xff] %v3453_v0 }
 0x19b   : > { %1169 = vrot.lane.b32.xlu1 %v569_v29, %s2537_s23  ;;  %1171 = vrot.lane.b32.xlu0 %v475_v46, %s2537_s23 }
 0x19d   : > { %v3459_v49 = vpop.permute.xlu1 %1059  ;;  %v3461_v1 = vpop.permute.xlu0 %1129 }
 0x19e   : > { %4179 = vst [vmem:[#allocation104_spill] sm:$0xff] %v3459_v49  ;;  %v539_v49 = vld [vmem:[#allocation2 + $0x139] sm:$0xff] }
 0x19f   : > { %1551 = vrot.lane.b32.xlu1 %v475_v46, %s2540_s9  ;;  %1297 = vrot.lane.b32.xlu0 %v4180_v62, %s2538_s28  ;;  %v523_v46 = vld [vmem:[#allocation2 + $0x79] sm:$0xff] }
 0x1a1   : > { %v3466_v7 = vpop.permute.xlu1 %1127  ;;  %v3468_v0 = vpop.permute.xlu0 %1133 }
 0x1a3   : > { %1265 = vrot.lane.b32.xlu1 %v491_v25, %s2538_s28  ;;  %1299 = vrot.lane.b32.xlu0 %v3075_v36, %s2538_s28  ;;  %v524_v25 = vld [vmem:[#allocation2 + $0x81] sm:$0xff] }
 0x1a5   : > { %v3473_v29 = vpop.permute.xlu1 %1131  ;;  %v3475_v48 = vpop.permute.xlu0 %1137 }
 0x1a6   : > { %4181 = vst [vmem:[#allocation46_spill] sm:$0xff] %v3475_v48 }
 0x1a7   : > { %1267 = vrot.lane.b32.xlu1 %v492_v24, %s2538_s28  ;;  %1425 = vrot.lane.b32.xlu0 %v539_v49, %s2539_s8  ;;  %v555_v24 = vld [vmem:[#allocation2 + $0x7a] sm:$0xff] }
 0x1a9   : > { %v3479_v62 = vpop.permute.xlu1 %1135  ;;  %v3481_v18 = vpop.permute.xlu0 %1141 }
 0x1aa   : > { %4182 = vst [vmem:[#allocation105_spill] sm:$0xff] %v3481_v18 }
 0x1ab   : > { %1393 = vrot.lane.b32.xlu1 %v523_v46, %s2539_s8  ;;  %1427 = vrot.lane.b32.xlu0 %v540_v54, %s2539_s8  ;;  %v477_v46 = vld [vmem:[#allocation2 + $0x142] sm:$0xff] }
 0x1ad   : > { %v3485_v36 = vpop.permute.xlu1 %1139  ;;  %v3487_v15 = vpop.permute.xlu0 %1145 }
 0x1ae   : > { %4183 = vst [vmem:[#allocation106_spill] sm:$0xff] %v3485_v36  ;;  %4184 = vst [vmem:[#allocation107_spill] sm:$0xff] %v3487_v15  ;;  %v4192_v36 = vld [vmem:[#allocation30_spill] sm:$0xff] }
 0x1af   : > { %1395 = vrot.lane.b32.xlu1 %v524_v25, %s2539_s8  ;;  %1553 = vrot.lane.b32.xlu0 %v571_v33, %s2540_s9 }
 0x1b1   : > { %v3491_v49 = vpop.permute.xlu1 %1143  ;;  %v3493_v23 = vpop.permute.xlu0 %1149 }
 0x1b2   : > { %4185 = vst [vmem:[#allocation108_spill] sm:$0xff] %v3491_v49  ;;  %4186 = vst [vmem:[#allocation109_spill] sm:$0xff] %v3493_v23  ;;  %v493_v23 = vld [vmem:[#allocation2 + $0x90] sm:$0xff] }
 0x1b3   : > { %1521 = vrot.lane.b32.xlu1 %v555_v24, %s2540_s9  ;;  %1523 = vrot.lane.b32.xlu0 %v556_v44, %s2540_s9  ;;  %v4190_v24 = vld [vmem:[#allocation50_spill] sm:$0xff] }
 0x1b5   : > { %v3497_v54 = vpop.permute.xlu1 %1147  ;;  %v3499_v18 = vpop.permute.xlu0 %1153 }
 0x1b6   : > { %4187 = vst [vmem:[#allocation110_spill] sm:$0xff] %v3497_v54  ;;  %4188 = vst [vmem:[#allocation111_spill] sm:$0xff] %v3499_v18  ;;  %v494_v54 = vld [vmem:[#allocation2 + $0x98] sm:$0xff] }
 0x1b7   : > { %1173 = vrot.lane.b32.xlu1 %v571_v33, %s2537_s23  ;;  %1175 = vrot.lane.b32.xlu0 %v477_v46, %s2537_s23  ;;  %v541_v18 = vld [vmem:[#allocation2 + $0x151] sm:$0xff] }
 0x1b9   : > { %v3503_v25 = vpop.permute.xlu1 %1151  ;;  %v3505_v15 = vpop.permute.xlu0 %1159 }
 0x1ba   : > { %4189 = vst [vmem:[#allocation112_spill] sm:$0xff] %v3503_v25  ;;  %v525_v25 = vld [vmem:[#allocation2 + $0x91] sm:$0xff] }
 0x1bb   : > { %1555 = vrot.lane.b32.xlu1 %v477_v46, %s2540_s9  ;;  %1301 = vrot.lane.b32.xlu0 %v4190_v24, %s2538_s28  ;;  %v4191_v24 = vld [vmem:[#allocation25_spill] sm:$0xff] }
 0x1bc   : > { %v1621_v16 = vsel %vm171_vm0, %v4192_v36, %v4191_v24  ;;  %v573_v24 = vld [vmem:[#allocation2 + $0x152] sm:$0xff] }
 0x1bd   : > { %v1158_v44 = vpop.permute.xlu1 %1157  ;;  %v1286_v49 = vpop.permute.xlu0 %1285  ;;  %v1654_v48 = vsel %vm1637_vm3, %v1621_v16, %v3131_v30 }
 0x1bf   : > { %1269 = vrot.lane.b32.xlu1 %v493_v23, %s2538_s28  ;;  %1303 = vrot.lane.b32.xlu0 %v3084_v39, %s2538_s28  ;;  %v292_v39 = vld [vmem:[#allocation2] sm:$0xff] }
 0x1c1   : > { %v1254_v33 = vpop.permute.xlu1 %1253  ;;  %v3513_v17 = vpop.permute.xlu0 %1287 }
 0x1c3   : > { %1271 = vrot.lane.b32.xlu1 %v494_v54, %s2538_s28  ;;  %1429 = vrot.lane.b32.xlu0 %v541_v18, %s2539_s8  ;;  %v1687_v54 = vsel %vm1670_vm4, %v1654_v48, %v3263_v6  ;;  %v4194_v6 = vld [vmem:[#allocation49_spill] sm:$0xff] }
 0x1c4   : > { %v1720_v36 = vsel %vm1703_vm5, %v1687_v54, %v3400_v51 }
 0x1c5   : > { %v1256_v46 = vpop.permute.xlu1 %1255  ;;  %v1414_v23 = vpop.permute.xlu0 %1413  ;;  %v1753_v30 = vsel %vm1736_vm6, %v1720_v36, %v1158_v44  ;;  %v4196_v44 = vld [vmem:[#allocation53_spill] sm:$0xff] }
 0x1c6   : > { %v1639_v54 = vsel %vm1637_vm3, %v1606_v3, %v4196_v44  ;;  %v558_v36 = vld [vmem:[#allocation2 + $0x9a] sm:$0xff] }
 0x1c7   : > { %1397 = vrot.lane.b32.xlu1 %v525_v25, %s2539_s8  ;;  %1431 = vrot.lane.b32.xlu0 %v542_v45, %s2539_s8  ;;  %v4193_v25 = vld [vmem:[#allocation5_spill] sm:$0xff]  ;;  %v557_v45 = vld [vmem:[#allocation2 + $0x92] sm:$0xff]  ;;  %v1672_v59 = vsel %vm1670_vm4, %v1639_v54, %v3209_v55 }
 0x1c8   : > { %v1605_v28 = vsel %vm171_vm0, %v292_v39, %v4193_v25  ;;  %v1705_v3 = vsel %vm1703_vm5, %v1672_v59, %v3354_v53  ;;  %v4197_v53 = vld [vmem:[#allocation28_spill] sm:$0xff] }
 0x1c9   : > { %v1382_v18 = vpop.permute.xlu1 %1381  ;;  %v1416_v16 = vpop.permute.xlu0 %1415  ;;  %v1638_v48 = vsel %vm1637_vm3, %v1605_v28, %v4194_v6  ;;  %v1786_v28 = vsel %vm1769_vm7, %v1753_v30, %v1286_v49  ;;  %v1738_v30 = vsel %vm1736_vm6, %v1705_v3, %v3466_v7  ;;  %v543_v3 = vld [vmem:[#allocation2 + $0x169] sm:$0xff] }
 0x1ca   : > { %v1671_v51 = vsel %vm1670_vm4, %v1638_v48, %v3195_v52  ;;  %v1819_v14 = vsel %vm1802_vm8, %v1786_v28, %v1414_v23  ;;  %v1771_v23 = vsel %vm1769_vm7, %v1738_v30, %v1256_v46  ;;  %v479_v48 = vld [vmem:[#allocation2 + $0x15a] sm:$0xff] }
 0x1cb   : > { %1399 = vrot.lane.b32.xlu1 %v526_v63, %s2539_s8  ;;  %1557 = vrot.lane.b32.xlu0 %v573_v24, %s2540_s9  ;;  %v1704_v63 = vsel %vm1703_vm5, %v1671_v51, %v3341_v37 }
 0x1cc   : > { %v1737_v52 = vsel %vm1736_vm6, %v1704_v63, %v3455_v47  ;;  %v511_v63 = vld [vmem:[#allocation2 + $0x168] sm:$0xff] }
 0x1cd   : > { %v1384_v39 = vpop.permute.xlu1 %1383  ;;  %v1542_v25 = vpop.permute.xlu0 %1541  ;;  %v1770_v37 = vsel %vm1769_vm7, %v1737_v52, %v1254_v33 }
 0x1ce   : > { %v1852_v49 = vsel %vm1835_vm9, %v1819_v14, %v1542_v25  ;;  %v1803_v55 = vsel %vm1802_vm8, %v1770_v37, %v1382_v18  ;;  %v1804_v51 = vsel %vm1802_vm8, %v1771_v23, %v1384_v39  ;;  %v4200_v23 = vld [vmem:[#allocation33_spill] sm:$0xff] }
 0x1cf   : > { %1525 = vrot.lane.b32.xlu1 %v557_v45, %s2540_s9  ;;  %1527 = vrot.lane.b32.xlu0 %v558_v36, %s2540_s9  ;;  %v4198_v45 = vld [vmem:[#allocation35_spill] sm:$0xff] }
 0x1d0   : > { %2447 = vmatprep.mubr.msk.f32.mxu1 %vm1873_vm10, %v1852_v49  ;;  %v1622_v33 = vsel %vm171_vm0, %v4198_v45, %v4197_v53  ;;  %v544_v49 = vld [vmem:[#allocation2 + $0x171] sm:$0xff] }
 0x1d1   : > { %v1510_v47 = vpop.permute.xlu1 %1509  ;;  %v1512_v44 = vpop.permute.xlu0 %1511  ;;  %v1655_v7 = vsel %vm1637_vm3, %v1622_v33, %v3145_v38  ;;  %v575_v45 = vld [vmem:[#allocation2 + $0x16a] sm:$0xff] }
 0x1d2   : > { %v1836_v6 = vsel %vm1835_vm9, %v1803_v55, %v1510_v47  ;;  %v1837_v18 = vsel %vm1835_vm9, %v1804_v51, %v1512_v44  ;;  %v1688_v46 = vsel %vm1670_vm4, %v1655_v7, %v3277_v9  ;;  %v495_v9 = vld [vmem:[#allocation2 + $0xa8] sm:$0xff]  ;;  %v528_v55 = vld [vmem:[#allocation2 + $0xb1] sm:$0xff] }
 0x1d3   : > { %1177 = vrot.lane.b32.xlu1 %v573_v24, %s2537_s23  ;;  %2423 = vmatprep.mubr.msk.f32.mxu0 %vm1873_vm10, %v1836_v6  ;;  %v1721_v39 = vsel %vm1703_vm5, %v1688_v46, %v3412_v27  ;;  %v512_v27 = vld [vmem:[#allocation2 + $0x170] sm:$0xff]  ;;  %v4203_v46 = vld [vmem:[#allocation52_spill] sm:$0xff] }
 0x1d4   : > { %1179 = vrot.lane.b32.xlu0 %v479_v48, %s2537_s23  ;;  %2424 = vmatmul.mubr.msk.f32.vlgmr.msra.gmra.mxu0 %vm1873_vm10, %v1837_v18  ;;  %v1754_v24 = vsel %vm1736_vm6, %v1721_v39, %v3505_v15  ;;  %v496_v15 = vld [vmem:[#allocation2 + $0xb0] sm:$0xff] }
 0x1d5   : > { %v1162_v54 = vpop.permute.xlu1 %1161  ;;  %v3578_v28 = vpop.permute.xlu0 %1163  ;;  %v1787_v38 = vsel %vm1769_vm7, %v1754_v24, %v3513_v17  ;;  %v4199_v47 = vld [vmem:[#allocation27_spill] sm:$0xff] }
 0x1d6   : > { %v1820_v36 = vsel %vm1802_vm8, %v1787_v38, %v1416_v16  ;;  %v527_v16 = vld [vmem:[#allocation2 + $0xa9] sm:$0xff]  ;;  %v1623_v6 = vsel %vm171_vm0, %v4200_v23, %v4199_v47  ;;  %v4204_v38 = vld [vmem:[#allocation9_spill] sm:$0xff] }
 0x1d7   : > { %1559 = vrot.lane.b32.xlu1 %v479_v48, %s2540_s9  ;;  %v1656_v53 = vsel %vm1637_vm3, %v1623_v6, %v3139_v32  ;;  %v4201_v33 = vld [vmem:[#allocation7_spill] sm:$0xff] }
 0x1d8   : > { %1305 = vrot.lane.b32.xlu0 %v511_v63, %s2538_s28  ;;  %v4202_v51 = vld [vmem:[#allocation11_spill] sm:$0xff]  ;;  %v1689_v7 = vsel %vm1670_vm4, %v1656_v53, %v3271_v2  ;;  %v4208_v53 = vld [vmem:[#allocation38_spill] sm:$0xff] }
 0x1d9   : > { %v1544_v59 = vpop.permute.xlu1 %1543  ;;  %v1290_v14 = vpop.permute.xlu0 %1289  ;;  %v1607_v44 = vsel %vm171_vm0, %v4202_v51, %v4201_v33  ;;  %v1722_v63 = vsel %vm1703_vm5, %v1689_v7, %v3406_v35  ;;  %v559_v24 = vld [vmem:[#allocation2 + $0xaa] sm:$0xff]  ;;  %v481_v6 = vld [vmem:[#allocation2 + $0x172] sm:$0xff] }
 0x1da   : > { %v1853_v52 = vsel %vm1835_vm9, %v1820_v36, %v1544_v59  ;;  %v1640_v39 = vsel %vm1637_vm3, %v1607_v44, %v4203_v46  ;;  %v4205_v32 = vld [vmem:[#allocation15_spill] sm:$0xff]  ;;  %v1755_v59 = vsel %vm1736_vm6, %v1722_v63, %v1162_v54  ;;  %v513_v46 = vld [vmem:[#allocation2 + $0x180] sm:$0xff]  ;;  %v2541_v63 = vmov 0  }
 0x1db   : > { %1273 = vrot.lane.b32.xlu1 %v495_v9, %s2538_s28  ;;  %2448 = vmatmul.mubr.msk.f32.vlgmr.msra.gmra.mxu1 %vm1873_vm10, %v1853_v52  ;;  %v1608_v9 = vsel %vm171_vm0, %v4205_v32, %v4204_v38  ;;  %v1673_v36 = vsel %vm1670_vm4, %v1640_v39, %v3203_v58  ;;  %v4206_v52 = vld [vmem:[#allocation55_spill] sm:$0xff]  ;;  %v1788_v35 = vsel %vm1769_vm7, %v1755_v59, %v1290_v14  ;;  %v514_v32 = vld [vmem:[#allocation2 + $0x188] sm:$0xff] }
 0x1dc   : > { %1307 = vrot.lane.b32.xlu0 %v512_v27, %s2538_s28  ;;  %v1641_v27 = vsel %vm1637_vm3, %v1608_v9, %v4206_v52  ;;  %2499 = vset.pattern.permute.xlu1 %v2541_v63  ;;  %v498_v9 = vld [vmem:[#allocation2 + $0xc8] sm:$0xff] }
 0x1dd   : > { %v1258_v25 = vpop.permute.xlu1 %1257  ;;  %v3589_v17 = vpop.permute.xlu0 %1291  ;;  %v530_v52 = vld [vmem:[#allocation2 + $0xc9] sm:$0xff] }
 0x1df   : > { %1275 = vrot.lane.b32.xlu1 %v496_v15, %s2538_s28  ;;  %v1706_v15 = vsel %vm1703_vm5, %v1673_v36, %v3348_v5 }
 0x1e0   : > { %1433 = vrot.lane.b32.xlu0 %v543_v3, %s2539_s8  ;;  %v560_v3 = vld [vmem:[#allocation2 + $0xb2] sm:$0xff]  ;;  %v1739_v58 = vsel %vm1736_vm6, %v1706_v15, %v3461_v1 }
 0x1e1   : > { %v1260_v37 = vpop.permute.xlu1 %1259  ;;  %v1418_v30 = vpop.permute.xlu0 %1417  ;;  %v1772_v47 = vsel %vm1769_vm7, %v1739_v58, %v1258_v25  ;;  %v2501_v58 = vld [vmem:[#allocation2 + $0x30] sm:$0xff] }
 0x1e2   : > { %v1821_v54 = vsel %vm1802_vm8, %v1788_v35, %v1418_v30 }
 0x1e3   : > { %1401 = vrot.lane.b32.xlu1 %v527_v16, %s2539_s8  ;;  %v1674_v16 = vsel %vm1670_vm4, %v1641_v27, %v3219_v57  ;;  %v4209_v27 = vld [vmem:[#allocation29_spill] sm:$0xff] }
 0x1e4   : > { %1435 = vrot.lane.b32.xlu0 %v544_v49, %s2539_s8  ;;  %v1625_v15 = vsel %vm171_vm0, %v3021_v19, %v4209_v27 }
 0x1e5   : > { %v1386_v48 = vpop.permute.xlu1 %1385  ;;  %v1420_v18 = vpop.permute.xlu0 %1419 }
 0x1e6   : > { %v1805_v57 = vsel %vm1802_vm8, %v1772_v47, %v1386_v48  ;;  %v4211_v47 = vld [vmem:[#allocation54_spill] sm:$0xff] }
 0x1e7   : > { %1403 = vrot.lane.b32.xlu1 %v528_v55, %s2539_s8  ;;  %v1707_v55 = vsel %vm1703_vm5, %v1674_v16, %v3362_v21  ;;  %v4207_v21 = vld [vmem:[#allocation31_spill] sm:$0xff]  ;;  %v577_v16 = vld [vmem:[#allocation2 + $0x182] sm:$0xff] }
 0x1e8   : > { %1561 = vrot.lane.b32.xlu0 %v575_v45, %s2540_s9  ;;  %v1740_v14 = vsel %vm1736_vm6, %v1707_v55, %v3473_v29  ;;  %v1624_v25 = vsel %vm171_vm0, %v4208_v53, %v4207_v21  ;;  %v562_v21 = vld [vmem:[#allocation2 + $0xca] sm:$0xff] }
 0x1e9   : > { %v1388_v2 = vpop.permute.xlu1 %1387  ;;  %v1546_v49 = vpop.permute.xlu0 %1545  ;;  %v1773_v30 = vsel %vm1769_vm7, %v1740_v14, %v1260_v37  ;;  %v1657_v29 = vsel %vm1637_vm3, %v1624_v25, %v3153_v41  ;;  %v2502_v14 = vld [vmem:[#allocation2 + $0x38] sm:$0xff] }
 0x1ea   : > { %v1854_v5 = vsel %vm1835_vm9, %v1821_v54, %v1546_v49  ;;  %v1806_v33 = vsel %vm1802_vm8, %v1773_v30, %v1388_v2  ;;  %v1690_v37 = vsel %vm1670_vm4, %v1657_v29, %v3285_v11  ;;  %v497_v11 = vld [vmem:[#allocation2 + $0xc0] sm:$0xff]  ;;  %v4210_v54 = vld [vmem:[#allocation8_spill] sm:$0xff] }
 0x1eb   : > { %1529 = vrot.lane.b32.xlu1 %v559_v24, %s2540_s9  ;;  %2450 = vmatprep.mubr.msk.f32.mxu1 %vm1873_vm10, %v1854_v5  ;;  %v1723_v7 = vsel %vm1703_vm5, %v1690_v37, %v3420_v26  ;;  %v561_v5 = vld [vmem:[#allocation2 + $0xc2] sm:$0xff] }
 0x1ec   : > { %1531 = vrot.lane.b32.xlu0 %v560_v3, %s2540_s9  ;;  %v1658_v3 = vsel %vm1637_vm3, %v1625_v15, %v3147_v40  ;;  %v4212_v40 = vld [vmem:[#allocation12_spill] sm:$0xff] }
 0x1ed   : > { %v1514_v1 = vpop.permute.xlu1 %1513  ;;  %v1516_v51 = vpop.permute.xlu0 %1515  ;;  %v1691_v49 = vsel %vm1670_vm4, %v1658_v3, %v3279_v10 }
 0x1ee   : > { %v1838_v23 = vsel %vm1835_vm9, %v1805_v57, %v1514_v1  ;;  %v1839_v48 = vsel %vm1835_vm9, %v1806_v33, %v1516_v51  ;;  %v1610_v57 = vsel %vm171_vm0, %v2502_v14, %v4212_v40 }
 0x1ef   : > { %1181 = vrot.lane.b32.xlu1 %v575_v45, %s2537_s23  ;;  %2426 = vmatprep.mubr.msk.f32.mxu0 %vm1873_vm10, %v1838_v23  ;;  %v1756_v45 = vsel %vm1736_vm6, %v1723_v7, %v3578_v28  ;;  %v1643_v23 = vsel %vm1637_vm3, %v1610_v57, %v3098_v22 }
 0x1f0   : > { %1183 = vrot.lane.b32.xlu0 %v481_v6, %s2537_s23  ;;  %2427 = vmatmul.mubr.msk.f32.gmra.mxu0 %vm1873_vm10, %v1839_v48  ;;  %v1789_v41 = vsel %vm1769_vm7, %v1756_v45, %v3589_v17  ;;  %v1676_v53 = vsel %vm1670_vm4, %v1643_v23, %v3229_v61  ;;  %v2506_v23 = vld [vmem:[#allocation2 + $0x50] sm:$0xff] }
 0x1f1   : > { %v1166_v44 = vpop.permute.xlu1 %1165  ;;  %v3656_v39 = vpop.permute.xlu0 %1167  ;;  %v1822_v24 = vsel %vm1802_vm8, %v1789_v41, %v1420_v18  ;;  %v529_v18 = vld [vmem:[#allocation2 + $0xc1] sm:$0xff]  ;;  %v1709_v22 = vsel %vm1703_vm5, %v1676_v53, %v3370_v4 }
 0x1f2   : > { %v1742_v29 = vsel %vm1736_vm6, %v1709_v22, %v3479_v62  ;;  %v4213_v4 = vld [vmem:[#allocation34_spill] sm:$0xff] }
 0x1f3   : > { %1563 = vrot.lane.b32.xlu1 %v481_v6, %s2540_s9 }
 0x1f4   : > { %1309 = vrot.lane.b32.xlu0 %v513_v46, %s2538_s28 }
 0x1f5   : > { %v1548_v26 = vpop.permute.xlu1 %1547  ;;  %v1294_v28 = vpop.permute.xlu0 %1293 }
 0x1f6   : > { %v1855_v38 = vsel %vm1835_vm9, %v1822_v24, %v1548_v26 }
 0x1f7   : > { %1277 = vrot.lane.b32.xlu1 %v497_v11, %s2538_s28  ;;  %2451 = vmatmul.mubr.msk.f32.gmra.mxu1 %vm1873_vm10, %v1855_v38  ;;  %v578_v11 = vld [vmem:[#allocation2 + $0x18a] sm:$0xff] }
 0x1f8   : > { %1311 = vrot.lane.b32.xlu0 %v514_v32, %s2538_s28  ;;  %v499_v32 = vld [vmem:[#allocation2 + $0xd8] sm:$0xff] }
 0x1f9   : > { %v1262_v17 = vpop.permute.xlu1 %1261  ;;  %v3668_v36 = vpop.permute.xlu0 %1295 }
 0x1fb   : > { %1279 = vrot.lane.b32.xlu1 %v498_v9, %s2538_s28 }
 0x1fc   : > { %1437 = vrot.lane.b32.xlu0 %v3211_v56, %s2539_s8  ;;  %v1609_v56 = vsel %vm171_vm0, %v2501_v58, %v4210_v54  ;;  %v2504_v58 = vld [vmem:[#allocation2 + $0x108] sm:$0xff]  ;;  %v4214_v54 = vld [vmem:[#allocation32_spill] sm:$0xff] }
 0x1fd   : > { %v1264_v59 = vpop.permute.xlu1 %1263  ;;  %v1422_v2 = vpop.permute.xlu0 %1421  ;;  %v1642_v19 = vsel %vm1637_vm3, %v1609_v56, %v4211_v47  ;;  %v1627_v56 = vsel %vm171_vm0, %v2504_v58, %v4214_v54  ;;  %v563_v47 = vld [vmem:[#allocation2 + $0xda] sm:$0xff] }
 0x1fe   : > { %v1675_v1 = vsel %vm1670_vm4, %v1642_v19, %v3213_v31  ;;  %v1775_v48 = vsel %vm1769_vm7, %v1742_v29, %v1264_v59  ;;  %v500_v59 = vld [vmem:[#allocation2 + $0xe0] sm:$0xff]  ;;  %v2505_v19 = vld [vmem:[#allocation2 + $0x48] sm:$0xff] }
 0x1ff   : > { %1405 = vrot.lane.b32.xlu1 %v529_v18, %s2539_s8  ;;  %v1708_v6 = vsel %vm1703_vm5, %v1675_v1, %v3356_v8  ;;  %v4216_v1 = vld [vmem:[#allocation4_spill] sm:$0xff]  ;;  %v2263_v54 = vld [vmem:[%s4041_s2] sm:$0xff] }
 0x200   : > { %1439 = vrot.lane.b32.xlu0 %v3225_v60, %s2539_s8  ;;  %v1724_v60 = vsel %vm1703_vm5, %v1691_v49, %v3414_v50  ;;  %v1741_v31 = vsel %vm1736_vm6, %v1708_v6, %v3468_v0 }
 0x201   : > { %v1390_v35 = vpop.permute.xlu1 %1389  ;;  %v1424_v55 = vpop.permute.xlu0 %1423  ;;  %v1757_v30 = vsel %vm1736_vm6, %v1724_v60, %v1166_v44  ;;  %v1774_v51 = vsel %vm1769_vm7, %v1741_v31, %v1262_v17  ;;  %v2503_v44 = vld [vmem:[#allocation2 + $0xf8] sm:$0xff]  ;;  %v4215_v60 = vld [vmem:[#allocation10_spill] sm:$0xff]  ;;  %v4219_v31 = vld [vmem:[#allocation57_spill] sm:$0xff] }
 0x202   : > { %v1790_v50 = vsel %vm1769_vm7, %v1757_v30, %v1294_v28  ;;  %v1807_v61 = vsel %vm1802_vm8, %v1774_v51, %v1390_v35  ;;  %v1626_v7 = vsel %vm171_vm0, %v2503_v44, %v4213_v4  ;;  %v532_v35 = vld [vmem:[#allocation2 + $0xe1] sm:$0xff]  ;;  %v4223_v44 = vld [vmem:[#allocation44_spill] sm:$0xff] }
 0x203   : > { %1407 = vrot.lane.b32.xlu1 %v530_v52, %s2539_s8  ;;  %v1823_v25 = vsel %vm1802_vm8, %v1790_v50, %v1422_v2  ;;  %v1659_v62 = vsel %vm1637_vm3, %v1626_v7, %v3161_v43  ;;  %v531_v52 = vld [vmem:[#allocation2 + $0xd9] sm:$0xff]  ;;  %v4218_v50 = vld [vmem:[#allocation74_spill] sm:$0xff] }
 0x204   : > { %1565 = vrot.lane.b32.xlu0 %v577_v16, %s2540_s9  ;;  %v1692_v24 = vsel %vm1670_vm4, %v1659_v62, %v3293_v13  ;;  %v564_v51 = vld [vmem:[#allocation2 + $0xe2] sm:$0xff] }
 0x205   : > { %v1392_v10 = vpop.permute.xlu1 %1391  ;;  %v1550_v33 = vpop.permute.xlu0 %1549  ;;  %v1725_v38 = vsel %vm1703_vm5, %v1692_v24, %v3428_v20  ;;  %v4224_v62 = vld [vmem:[#allocation106_spill] sm:$0xff] }
 0x206   : > { %v1856_v8 = vsel %vm1835_vm9, %v1823_v25, %v1550_v33  ;;  %v1808_v46 = vsel %vm1802_vm8, %v1775_v48, %v1392_v10  ;;  %v1758_v28 = vsel %vm1736_vm6, %v1725_v38, %v3656_v39  ;;  %v515_v39 = vld [vmem:[#allocation2 + $0x198] sm:$0xff]  ;;  %v548_v10 = vld [vmem:[#allocation2 + $0x1a1] sm:$0xff] }
 0x207   : > { %1533 = vrot.lane.b32.xlu1 %v561_v5, %s2540_s9  ;;  %2453 = vmatprep.mubr.msk.f32.mxu1 %vm1873_vm10, %v1856_v8  ;;  %v1791_v43 = vsel %vm1769_vm7, %v1758_v28, %v3668_v36  ;;  %v516_v36 = vld [vmem:[#allocation2 + $0x1a0] sm:$0xff]  ;;  %v1611_v5 = vsel %vm171_vm0, %v2505_v19, %v4215_v60  ;;  %v4221_v8 = vld [vmem:[#allocation76_spill] sm:$0xff] }
 0x208   : > { %1535 = vrot.lane.b32.xlu0 %v562_v21, %s2540_s9  ;;  %v1824_v13 = vsel %vm1802_vm8, %v1791_v43, %v1424_v55  ;;  %v1660_v55 = vsel %vm1637_vm3, %v1627_v56, %v3155_v42  ;;  %v1644_v57 = vsel %vm1637_vm3, %v1611_v5, %v3093_v34  ;;  %v4217_v42 = vld [vmem:[#allocation14_spill] sm:$0xff]  ;;  %v4220_v34 = vld [vmem:[#allocation93_spill] sm:$0xff] }
 0x209   : > { %v1518_v0 = vpop.permute.xlu1 %1517  ;;  %v1520_v45 = vpop.permute.xlu0 %1519  ;;  %v1693_v14 = vsel %vm1670_vm4, %v1660_v55, %v3287_v12  ;;  %v1612_v6 = vsel %vm171_vm0, %v2506_v23, %v4217_v42  ;;  %v4225_v28 = vld [vmem:[#allocation37_spill] sm:$0xff] }
 0x20a   : > { %v1840_v37 = vsel %vm1835_vm9, %v1807_v61, %v1518_v0  ;;  %v1841_v41 = vsel %vm1835_vm9, %v1808_v46, %v1520_v45  ;;  %v1726_v30 = vsel %vm1703_vm5, %v1693_v14, %v4216_v1  ;;  %v1645_v25 = vsel %vm1637_vm3, %v1612_v6, %v4219_v31  ;;  %v4222_v61 = vld [vmem:[#allocation46_spill] sm:$0xff]  ;;  %v579_v45 = vld [vmem:[#allocation2 + $0x19a] sm:$0xff] }
 0x20b   : > { %1185 = vrot.lane.b32.xlu1 %v577_v16, %s2537_s23  ;;  %2429 = vmatprep.mubr.msk.f32.mxu0 %vm1873_vm10, %v1840_v37  ;;  %v547_v16 = vld [vmem:[#allocation2 + $0x199] sm:$0xff]  ;;  %v1678_v29 = vsel %vm1670_vm4, %v1645_v25, %v4221_v8  ;;  %v4234_v31 = vld [vmem:[#allocation42_spill] sm:$0xff] }
 0x20c   : > { %1155 = vrot.lane.b32.xlu0 %v562_v21, %s2537_s23  ;;  %2430 = vmatmul.mubr.msk.f32.gmra.mxu0 %vm1873_vm10, %v1841_v41  ;;  %v1677_v21 = vsel %vm1670_vm4, %v1644_v57, %v4218_v50  ;;  %v1711_v4 = vsel %vm1703_vm5, %v1678_v29, %v4223_v44  ;;  %v2508_v14 = vld [vmem:[#allocation2 + $0x120] sm:$0xff]  ;;  %v4229_v57 = vld [vmem:[#allocation36_spill] sm:$0xff] }
 0x20d   : > { %v1170_v26 = vpop.permute.xlu1 %1169  ;;  %v3734_v9 = vpop.permute.xlu0 %1171  ;;  %v1710_v33 = vsel %vm1703_vm5, %v1677_v21, %v4220_v34  ;;  %v1744_v41 = vsel %vm1736_vm6, %v1711_v4, %v4224_v62  ;;  %v4231_v23 = vld [vmem:[#allocation13_spill] sm:$0xff]  ;;  %v4232_v6 = vld [vmem:[#allocation84_spill] sm:$0xff]  ;;  %v2510_v34 = vld [vmem:[#allocation2 + $0x68] sm:$0xff] }
 0x20e   : > { %v1759_v53 = vsel %vm1736_vm6, %v1726_v30, %v1170_v26  ;;  %v1743_v0 = vsel %vm1736_vm6, %v1710_v33, %v4222_v61  ;;  %v4230_v30 = vld [vmem:[#allocation65_spill] sm:$0xff] }
 0x20f   : > { %1567 = vrot.lane.b32.xlu1 %v578_v11, %s2540_s9  ;;  %v4235_v33 = vld [vmem:[#allocation17_spill] sm:$0xff] }
 0x210   : > { %1281 = vrot.lane.b32.xlu0 %v499_v32, %s2538_s28  ;;  %v2507_v32 = vld [vmem:[#allocation2 + $0x110] sm:$0xff] }
 0x211   : > { %v1552_v17 = vpop.permute.xlu1 %1551  ;;  %v1298_v20 = vpop.permute.xlu0 %1297  ;;  %v1628_v43 = vsel %vm171_vm0, %v2507_v32, %v4225_v28  ;;  %v4242_v28 = vld [vmem:[#allocation108_spill] sm:$0xff] }
 0x212   : > { %v1857_v18 = vsel %vm1835_vm9, %v1824_v13, %v1552_v17  ;;  %v1792_v22 = vsel %vm1769_vm7, %v1759_v53, %v1298_v20  ;;  %v4233_v53 = vld [vmem:[#allocation56_spill] sm:$0xff] }
 0x213   : > { %1187 = vrot.lane.b32.xlu1 %v578_v11, %s2537_s23  ;;  %2454 = vmatmul.mubr.msk.f32.gmra.mxu1 %vm1873_vm10, %v1857_v18  ;;  %v4226_v18 = vld [vmem:[#allocation66_spill] sm:$0xff] }
 0x214   : > { %1283 = vrot.lane.b32.xlu0 %v500_v59, %s2538_s28  ;;  %v1661_v59 = vsel %vm1637_vm3, %v1628_v43, %v4226_v18 }
 0x215   : > { %v1266_v2 = vpop.permute.xlu1 %1265  ;;  %v3745_v27 = vpop.permute.xlu0 %1299 }
 0x216   : > { %v1776_v7 = vsel %vm1769_vm7, %v1743_v0, %v1266_v2  ;;  %v4227_v2 = vld [vmem:[#allocation85_spill] sm:$0xff]  ;;  %v4237_v0 = vld [vmem:[#allocation59_spill] sm:$0xff] }
 0x217   : > { %1313 = vrot.lane.b32.xlu1 %v515_v39, %s2538_s28  ;;  %v580_v39 = vld [vmem:[#allocation2 + $0x1a2] sm:$0xff] }
 0x218   : > { %1409 = vrot.lane.b32.xlu0 %v531_v52, %s2539_s8  ;;  %v1694_v52 = vsel %vm1670_vm4, %v1661_v59, %v4227_v2 }
 0x219   : > { %v1268_v15 = vpop.permute.xlu1 %1267  ;;  %v1426_v3 = vpop.permute.xlu0 %1425 }
 0x21a   : > { %v1825_v48 = vsel %vm1802_vm8, %v1792_v22, %v1426_v3  ;;  %v1777_v26 = vsel %vm1769_vm7, %v1744_v41, %v1268_v15  ;;  %v4228_v15 = vld [vmem:[#allocation19_spill] sm:$0xff]  ;;  %v1614_v22 = vsel %vm171_vm0, %v2510_v34, %v4235_v33  ;;  %v4251_v33 = vld [vmem:[#allocation58_spill] sm:$0xff] }
 0x21b   : > { %1315 = vrot.lane.b32.xlu1 %v516_v36, %s2538_s28 }
 0x21c   : > { %1411 = vrot.lane.b32.xlu0 %v532_v35, %s2539_s8  ;;  %v1727_v35 = vsel %vm1703_vm5, %v1694_v52, %v4228_v15  ;;  %v4244_v15 = vld [vmem:[#allocation68_spill] sm:$0xff] }
 0x21d   : > { %v1394_v49 = vpop.permute.xlu1 %1393  ;;  %v1428_v40 = vpop.permute.xlu0 %1427  ;;  %v1760_v3 = vsel %vm1736_vm6, %v1727_v35, %v3734_v9 }
 0x21e   : > { %v1809_v11 = vsel %vm1802_vm8, %v1776_v7, %v1394_v49  ;;  %v1793_v58 = vsel %vm1769_vm7, %v1760_v3, %v3745_v27  ;;  %v1629_v27 = vsel %vm171_vm0, %v2508_v14, %v4229_v57  ;;  %v4239_v7 = vld [vmem:[#allocation78_spill] sm:$0xff] }
 0x21f   : > { %1441 = vrot.lane.b32.xlu1 %v547_v16, %s2539_s8  ;;  %v1826_v56 = vsel %vm1802_vm8, %v1793_v58, %v1428_v40  ;;  %v2509_v40 = vld [vmem:[#allocation2 + $0x60] sm:$0xff]  ;;  %v4245_v58 = vld [vmem:[#allocation87_spill] sm:$0xff] }
 0x220   : > { %1537 = vrot.lane.b32.xlu0 %v563_v47, %s2540_s9  ;;  %v1613_v42 = vsel %vm171_vm0, %v2509_v40, %v4231_v23  ;;  %v2512_v23 = vld [vmem:[#allocation2 + $0x138] sm:$0xff] }
 0x221   : > { %v1396_v12 = vpop.permute.xlu1 %1395  ;;  %v1554_v37 = vpop.permute.xlu0 %1553 }
 0x222   : > { %v1858_v46 = vsel %vm1835_vm9, %v1825_v48, %v1554_v37  ;;  %v1810_v13 = vsel %vm1802_vm8, %v1777_v26, %v1396_v12  ;;  %v1646_v12 = vsel %vm1637_vm3, %v1613_v42, %v4233_v53  ;;  %v1647_v48 = vsel %vm1637_vm3, %v1614_v22, %v4237_v0  ;;  %v4238_v37 = vld [vmem:[#allocation94_spill] sm:$0xff]  ;;  %v4247_v42 = vld [vmem:[#allocation39_spill] sm:$0xff]  ;;  %v2513_v53 = vld [vmem:[#allocation2 + $0x78] sm:$0xff] }
 0x223   : > { %1443 = vrot.lane.b32.xlu1 %v548_v10, %s2539_s8  ;;  %2456 = vmatprep.mubr.msk.f32.mxu1 %vm1873_vm10, %v1858_v46  ;;  %v1662_v10 = vsel %vm1637_vm3, %v1629_v27, %v4230_v30  ;;  %v1680_v46 = vsel %vm1670_vm4, %v1647_v48, %v4239_v7  ;;  %v4254_v48 = vld [vmem:[#allocation77_spill] sm:$0xff] }
 0x224   : > { %1539 = vrot.lane.b32.xlu0 %v564_v51, %s2540_s9  ;;  %v1695_v50 = vsel %vm1670_vm4, %v1662_v10, %v4232_v6  ;;  %v4236_v51 = vld [vmem:[#allocation75_spill] sm:$0xff]  ;;  %v1631_v6 = vsel %vm171_vm0, %v2512_v23, %v4247_v42  ;;  %v4255_v7 = vld [vmem:[#allocation61_spill] sm:$0xff] }
 0x225   : > { %v1522_v24 = vpop.permute.xlu1 %1521  ;;  %v1524_v17 = vpop.permute.xlu0 %1523  ;;  %v1728_v25 = vsel %vm1703_vm5, %v1695_v50, %v4234_v31  ;;  %v1679_v8 = vsel %vm1670_vm4, %v1646_v12, %v4236_v51  ;;  %v4248_v50 = vld [vmem:[#allocation67_spill] sm:$0xff]  ;;  %v4250_v31 = vld [vmem:[#allocation86_spill] sm:$0xff]  ;;  %v4252_v51 = vld [vmem:[#allocation48_spill] sm:$0xff] }
 0x226   : > { %v1842_v38 = vsel %vm1835_vm9, %v1809_v11, %v1522_v24  ;;  %v1843_v20 = vsel %vm1835_vm9, %v1810_v13, %v1524_v17  ;;  %v1712_v44 = vsel %vm1703_vm5, %v1679_v8, %v4238_v37  ;;  %v4241_v24 = vld [vmem:[#allocation21_spill] sm:$0xff] }
 0x227   : > { %1569 = vrot.lane.b32.xlu1 %v579_v45, %s2540_s9  ;;  %2432 = vmatprep.mubr.msk.f32.mxu0 %vm1873_vm10, %v1842_v38  ;;  %v4240_v45 = vld [vmem:[#allocation105_spill] sm:$0xff]  ;;  %v1713_v26 = vsel %vm1703_vm5, %v1680_v46, %v4241_v24 }
 0x228   : > { %2433 = vmatmul.mubr.msk.f32.gmra.mxu0 %vm1873_vm10, %v1843_v20  ;;  %v1745_v62 = vsel %vm1736_vm6, %v1712_v44, %v4240_v45  ;;  %v1746_v43 = vsel %vm1736_vm6, %v1713_v26, %v4242_v28  ;;  %v2511_v20 = vld [vmem:[#allocation2 + $0x128] sm:$0xff]  ;;  %v4256_v45 = vld [vmem:[#allocation95_spill] sm:$0xff] }
 0x229   : > { %v1174_v36 = vpop.permute.xlu1 %1173  ;;  %v1176_v16 = vpop.permute.xlu0 %1175  ;;  %v4258_v26 = vld [vmem:[#allocation107_spill] sm:$0xff] }
 0x22a   : > { %v1761_v29 = vsel %vm1736_vm6, %v1728_v25, %v1174_v36 }
 0x22b   : > { %1571 = vrot.lane.b32.xlu1 %v580_v39, %s2540_s9  ;;  %v4243_v39 = vld [vmem:[#allocation40_spill] sm:$0xff] }
 0x22c   : > { %v1630_v2 = vsel %vm171_vm0, %v2511_v20, %v4243_v39 }
 0x22d   : > { %v1556_v49 = vpop.permute.xlu1 %1555  ;;  %v1302_v47 = vpop.permute.xlu0 %1301  ;;  %v1663_v35 = vsel %vm1637_vm3, %v1630_v2, %v4244_v15  ;;  %v2515_v15 = vld [vmem:[#allocation2 + $0x140] sm:$0xff] }
 0x22e   : > { %v1859_v55 = vsel %vm1835_vm9, %v1826_v56, %v1556_v49  ;;  %v1794_v4 = vsel %vm1769_vm7, %v1761_v29, %v1302_v47  ;;  %v4246_v49 = vld [vmem:[#allocation24_spill] sm:$0xff]  ;;  %v2514_v29 = vld [vmem:[#allocation2 + $0x80] sm:$0xff] }
 0x22f   : > { %2457 = vmatmul.mubr.msk.f32.gmra.mxu1 %vm1873_vm10, %v1859_v55  ;;  %2266 = vperm.xlu1 %2499, %v2263_v54   ;;  %v1696_v54 = vsel %vm1670_vm4, %v1663_v35, %v4245_v58  ;;  %v4261_v35 = vld [vmem:[#allocation43_spill] sm:$0xff] }
 0x230   : > { %v1729_v55 = vsel %vm1703_vm5, %v1696_v54, %v4246_v49 }
 0x231   : > { %v1270_v9 = vpop.permute.xlu1 %1269  ;;  %v1304_v19 = vpop.permute.xlu0 %1303  ;;  %v1762_v47 = vsel %vm1736_vm6, %v1729_v55, %v1176_v16 }
 0x232   : > { %v1778_v38 = vsel %vm1769_vm7, %v1745_v62, %v1270_v9 }
 0x235   : > { %v1272_v60 = vpop.permute.xlu1 %1271  ;;  %v1430_v5 = vpop.permute.xlu0 %1429 }
 0x236   : > { %v1827_v41 = vsel %vm1802_vm8, %v1794_v4, %v1430_v5  ;;  %v1779_v18 = vsel %vm1769_vm7, %v1746_v43, %v1272_v60  ;;  %v1795_v60 = vsel %vm1769_vm7, %v1762_v47, %v1304_v19  ;;  %v1664_v19 = vsel %vm1637_vm3, %v1631_v6, %v4248_v50  ;;  %v4259_v43 = vld [vmem:[#allocation97_spill] sm:$0xff] }
 0x237   : > { %v1697_v25 = vsel %vm1670_vm4, %v1664_v19, %v4250_v31  ;;  %v4263_v47 = vld [vmem:[#allocation89_spill] sm:$0xff] }
 0x238   : > { %v1730_v8 = vsel %vm1703_vm5, %v1697_v25, %v4252_v51  ;;  %v4266_v25 = vld [vmem:[#allocation69_spill] sm:$0xff]  ;;  %v4268_v51 = vld [vmem:[#allocation88_spill] sm:$0xff] }
 0x239   : > { %v1398_v1 = vpop.permute.xlu1 %1397  ;;  %v1432_v21 = vpop.permute.xlu0 %1431 }
 0x23a   : > { %v1811_v13 = vsel %vm1802_vm8, %v1778_v38, %v1398_v1  ;;  %v1828_v5 = vsel %vm1802_vm8, %v1795_v60, %v1432_v21  ;;  %v4249_v21 = vld [vmem:[#allocation16_spill] sm:$0xff] }
 0x23b   : > { %v1615_v12 = vsel %vm171_vm0, %v2513_v53, %v4249_v21  ;;  %v2516_v21 = vld [vmem:[#allocation2 + $0x150] sm:$0xff] }
 0x23c   : > { %v1648_v22 = vsel %vm1637_vm3, %v1615_v12, %v4251_v33  ;;  %v4265_v12 = vld [vmem:[#allocation41_spill] sm:$0xff]  ;;  %v2517_v33 = vld [vmem:[#allocation2 + $0x90] sm:$0xff] }
 0x23d   : > { %v1400_v61 = vpop.permute.xlu1 %1399  ;;  %v1558_v11 = vpop.permute.xlu0 %1557  ;;  %v1681_v37 = vsel %vm1670_vm4, %v1648_v22, %v4254_v48  ;;  %v1633_v31 = vsel %vm171_vm0, %v2516_v21, %v4265_v12  ;;  %v4270_v48 = vld [vmem:[#allocation100_spill] sm:$0xff] }
 0x23e   : > { %v1860_v32 = vsel %vm1835_vm9, %v1827_v41, %v1558_v11  ;;  %v1812_v52 = vsel %vm1802_vm8, %v1779_v18, %v1400_v61  ;;  %v4253_v61 = vld [vmem:[#allocation20_spill] sm:$0xff]  ;;  %v1714_v62 = vsel %vm1703_vm5, %v1681_v37, %v4256_v45 }
 0x23f   : > { %2459 = vmatprep.mubr.msk.f32.mxu1 %vm1873_vm10, %v1860_v32  ;;  %v1616_v0 = vsel %vm171_vm0, %v2514_v29, %v4253_v61  ;;  %v4257_v11 = vld [vmem:[#allocation80_spill] sm:$0xff]  ;;  %v1747_v38 = vsel %vm1736_vm6, %v1714_v62, %v4258_v26 }
 0x240   : > { %v1649_v46 = vsel %vm1637_vm3, %v1616_v0, %v4255_v7  ;;  %v4269_v61 = vld [vmem:[#allocation60_spill] sm:$0xff] }
 0x241   : > { %v1526_v17 = vpop.permute.xlu1 %1525  ;;  %v1528_v36 = vpop.permute.xlu0 %1527  ;;  %v1682_v24 = vsel %vm1670_vm4, %v1649_v46, %v4257_v11  ;;  %v4272_v46 = vld [vmem:[#allocation79_spill] sm:$0xff]  ;;  %v4274_v26 = vld [vmem:[#allocation96_spill] sm:$0xff] }
 0x242   : > { %v1844_v59 = vsel %vm1835_vm9, %v1811_v13, %v1526_v17  ;;  %v1845_v3 = vsel %vm1835_vm9, %v1812_v52, %v1528_v36  ;;  %v1715_v13 = vsel %vm1703_vm5, %v1682_v24, %v4259_v43  ;;  %v4273_v11 = vld [vmem:[#allocation63_spill] sm:$0xff] }
 0x243   : > { %2435 = vmatprep.mubr.msk.f32.mxu0 %vm1873_vm10, %v1844_v59  ;;  %v4260_v59 = vld [vmem:[#allocation110_spill] sm:$0xff] }
 0x244   : > { %2436 = vmatmul.mubr.msk.f32.gmra.mxu0 %vm1873_vm10, %v1845_v3  ;;  %v1748_v20 = vsel %vm1736_vm6, %v1715_v13, %v4260_v59  ;;  %v1632_v3 = vsel %vm171_vm0, %v2515_v15, %v4261_v35  ;;  %v4276_v13 = vld [vmem:[#allocation109_spill] sm:$0xff] }
 0x245   : > { %v1178_v56 = vpop.permute.xlu1 %1177 }
 0x246   : > { %v1180_v9 = vpop.permute.xlu0 %1179  ;;  %v1763_v44 = vsel %vm1736_vm6, %v1730_v8, %v1178_v56  ;;  %v4262_v56 = vld [vmem:[#allocation70_spill] sm:$0xff] }
 0x247   : > { %v1665_v49 = vsel %vm1637_vm3, %v1632_v3, %v4262_v56  ;;  %v2519_v56 = vld [vmem:[#allocation2 + $0x158] sm:$0xff] }
 0x248   : > { %v1698_v60 = vsel %vm1670_vm4, %v1665_v49, %v4263_v47  ;;  %v4279_v49 = vld [vmem:[#allocation47_spill] sm:$0xff] }
 0x249   : > { %v1560_v14 = vpop.permute.xlu1 %1559 }
 0x24a   : > { %v1861_v57 = vsel %vm1835_vm9, %v1828_v5, %v1560_v14  ;;  %v1306_v27 = vpop.permute.xlu0 %1305  ;;  %v4264_v14 = vld [vmem:[#allocation101_spill] sm:$0xff] }
 0x24b   : > { %2460 = vmatmul.mubr.msk.f32.gmra.mxu1 %vm1873_vm10, %v1861_v57  ;;  %v1796_v41 = vsel %vm1769_vm7, %v1763_v44, %v1306_v27  ;;  %v1731_v57 = vsel %vm1703_vm5, %v1698_v60, %v4264_v14  ;;  %v2518_v44 = vld [vmem:[#allocation2 + $0x98] sm:$0xff] }
 0x24c   : > { %v1764_v27 = vsel %vm1736_vm6, %v1731_v57, %v1180_v9 }
 0x24d   : > { %v1274_v1 = vpop.permute.xlu1 %1273 }
 0x24e   : > { %v1308_v30 = vpop.permute.xlu0 %1307  ;;  %v1780_v17 = vsel %vm1769_vm7, %v1747_v38, %v1274_v1 }
 0x251   : > { %v1276_v10 = vpop.permute.xlu1 %1275 }
 0x252   : > { %v1434_v40 = vpop.permute.xlu0 %1433  ;;  %v1781_v52 = vsel %vm1769_vm7, %v1748_v20, %v1276_v10  ;;  %v1797_v10 = vsel %vm1769_vm7, %v1764_v27, %v1308_v30  ;;  %v1666_v30 = vsel %vm1637_vm3, %v1633_v31, %v4266_v25  ;;  %v4277_v20 = vld [vmem:[#allocation3_spill] sm:$0xff] }
 0x253   : > { %v1829_v32 = vsel %vm1802_vm8, %v1796_v41, %v1434_v40  ;;  %v1699_v8 = vsel %vm1670_vm4, %v1666_v30, %v4268_v51  ;;  %v4281_v27 = vld [vmem:[#allocation91_spill] sm:$0xff] }
 0x254   : > { %v1732_v37 = vsel %vm1703_vm5, %v1699_v8, %v4270_v48  ;;  %v4284_v8 = vld [vmem:[#allocation62_spill] sm:$0xff] }
 0x255   : > { %v1402_v16 = vpop.permute.xlu1 %1401  ;;  %v4286_v48 = vld [vmem:[#allocation98_spill] sm:$0xff] }
 0x256   : > { %v1436_v34 = vpop.permute.xlu0 %1435  ;;  %v1813_v39 = vsel %vm1802_vm8, %v1780_v17, %v1402_v16 }
 0x257   : > { %v1830_v40 = vsel %vm1802_vm8, %v1797_v10, %v1436_v34  ;;  %v4267_v34 = vld [vmem:[#allocation18_spill] sm:$0xff] }
 0x258   : > { %v1617_v22 = vsel %vm171_vm0, %v2517_v33, %v4267_v34  ;;  %v2520_v34 = vld [vmem:[#allocation2 + $0xa8] sm:$0xff] }
 0x259   : > { %v1404_v4 = vpop.permute.xlu1 %1403  ;;  %v1650_v0 = vsel %vm1637_vm3, %v1617_v22, %v4269_v61  ;;  %v4283_v22 = vld [vmem:[#allocation22_spill] sm:$0xff]  ;;  %v4285_v61 = vld [vmem:[#allocation81_spill] sm:$0xff] }
 0x25a   : > { %v1562_v28 = vpop.permute.xlu0 %1561  ;;  %v1814_v58 = vsel %vm1802_vm8, %v1781_v52, %v1404_v4  ;;  %v4271_v4 = vld [vmem:[#allocation23_spill] sm:$0xff]  ;;  %v1683_v45 = vsel %vm1670_vm4, %v1650_v0, %v4272_v46  ;;  %v1619_v51 = vsel %vm171_vm0, %v2520_v34, %v4283_v22 }
 0x25b   : > { %v1862_v18 = vsel %vm1835_vm9, %v1829_v32, %v1562_v28  ;;  %v1618_v7 = vsel %vm171_vm0, %v2518_v44, %v4271_v4  ;;  %v1716_v38 = vsel %vm1703_vm5, %v1683_v45, %v4274_v26  ;;  %v4275_v28 = vld [vmem:[#allocation82_spill] sm:$0xff]  ;;  %v2521_v44 = vld [vmem:[#allocation2 + $0xb0] sm:$0xff] }
 0x25c   : > { %2462 = vmatprep.mubr.msk.f32.mxu1 %vm1873_vm10, %v1862_v18  ;;  %v1651_v24 = vsel %vm1637_vm3, %v1618_v7, %v4273_v11  ;;  %v1749_v17 = vsel %vm1736_vm6, %v1716_v38, %v4276_v13  ;;  %v4287_v4 = vld [vmem:[#allocation26_spill] sm:$0xff]  ;;  %v4288_v46 = vld [vmem:[#allocation111_spill] sm:$0xff]  ;;  %v4290_v38 = vld [vmem:[#allocation45_spill] sm:$0xff] }
 0x25d   : > { %v1530_v2 = vpop.permute.xlu1 %1529  ;;  %v1684_v43 = vsel %vm1670_vm4, %v1651_v24, %v4275_v28  ;;  %v1620_v7 = vsel %vm171_vm0, %v2521_v44, %v4287_v4  ;;  %v2522_v26 = vld [vmem:[#allocation2 + $0x168] sm:$0xff]  ;;  %v4291_v28 = vld [vmem:[#allocation83_spill] sm:$0xff] }
 0x25e   : > { %v1846_v36 = vsel %vm1835_vm9, %v1813_v39, %v1530_v2  ;;  %v1532_v54 = vpop.permute.xlu0 %1531  ;;  %v1717_v39 = vsel %vm1703_vm5, %v1684_v43, %v4277_v20  ;;  %v4293_v20 = vld [vmem:[#allocation99_spill] sm:$0xff] }
 0x25f   : > { %2438 = vmatprep.mubr.msk.f32.mxu0 %vm1873_vm10, %v1846_v36  ;;  %v1847_v55 = vsel %vm1835_vm9, %v1814_v58, %v1532_v54  ;;  %v4278_v36 = vld [vmem:[#allocation112_spill] sm:$0xff] }
 0x260   : > { %2439 = vmatmul.mubr.msk.f32.gmra.mxu0 %vm1873_vm10, %v1847_v55  ;;  %v1750_v15 = vsel %vm1736_vm6, %v1717_v39, %v4278_v36  ;;  %v1634_v55 = vsel %vm171_vm0, %v2519_v56, %v4279_v49  ;;  %v2523_v49 = vld [vmem:[#allocation2 + $0x170] sm:$0xff] }
 0x261   : > { %v1182_v5 = vpop.permute.xlu1 %1181 }
 0x262   : > { %v1184_v1 = vpop.permute.xlu0 %1183  ;;  %v1765_v62 = vsel %vm1736_vm6, %v1732_v37, %v1182_v5  ;;  %v4280_v5 = vld [vmem:[#allocation72_spill] sm:$0xff] }
 0x263   : > { %v1667_v14 = vsel %vm1637_vm3, %v1634_v55, %v4280_v5  ;;  %v4296_v55 = vld [vmem:[#allocation51_spill] sm:$0xff] }
 0x264   : > { %v1700_v10 = vsel %vm1670_vm4, %v1667_v14, %v4281_v27  ;;  %v4297_v27 = vld [vmem:[#allocation73_spill] sm:$0xff] }
 0x265   : > { %v1564_v23 = vpop.permute.xlu1 %1563 }
 0x266   : > { %v1863_v42 = vsel %vm1835_vm9, %v1830_v40, %v1564_v23  ;;  %v1310_v6 = vpop.permute.xlu0 %1309  ;;  %v4282_v23 = vld [vmem:[#allocation103_spill] sm:$0xff] }
 0x267   : > { %2463 = vmatmul.mubr.msk.f32.gmra.mxu1 %vm1873_vm10, %v1863_v42  ;;  %v1798_v32 = vsel %vm1769_vm7, %v1765_v62, %v1310_v6  ;;  %v1733_v42 = vsel %vm1703_vm5, %v1700_v10, %v4282_v23 }
 0x268   : > { %v1766_v6 = vsel %vm1736_vm6, %v1733_v42, %v1184_v1 }
 0x269   : > { %v1278_v16 = vpop.permute.xlu1 %1277 }
 0x26a   : > { %v1312_v50 = vpop.permute.xlu0 %1311  ;;  %v1782_v2 = vsel %vm1769_vm7, %v1749_v17, %v1278_v16 }
 0x26d   : > { %v1280_v19 = vpop.permute.xlu1 %1279 }
 0x26e   : > { %v1438_v53 = vpop.permute.xlu0 %1437  ;;  %v1783_v58 = vsel %vm1769_vm7, %v1750_v15, %v1280_v19  ;;  %v1799_v19 = vsel %vm1769_vm7, %v1766_v6, %v1312_v50  ;;  %v1652_v50 = vsel %vm1637_vm3, %v1619_v51, %v4284_v8  ;;  %v4298_v6 = vld [vmem:[#allocation92_spill] sm:$0xff] }
 0x26f   : > { %v1831_v18 = vsel %vm1802_vm8, %v1798_v32, %v1438_v53  ;;  %v1635_v32 = vsel %vm171_vm0, %v2522_v26, %v4290_v38 }
 0x271   : > { %v1406_v9 = vpop.permute.xlu1 %1405 }
 0x272   : > { %v1440_v29 = vpop.permute.xlu0 %1439  ;;  %v1815_v35 = vsel %vm1802_vm8, %v1782_v2, %v1406_v9 }
 0x273   : > { %v1832_v53 = vsel %vm1802_vm8, %v1799_v19, %v1440_v29  ;;  %v1685_v29 = vsel %vm1670_vm4, %v1652_v50, %v4285_v61 }
 0x274   : > { %v1718_v37 = vsel %vm1703_vm5, %v1685_v29, %v4286_v48 }
 0x275   : > { %v1408_v41 = vpop.permute.xlu1 %1407  ;;  %v1751_v45 = vsel %vm1736_vm6, %v1718_v37, %v4288_v46 }
 0x276   : > { %v1566_v59 = vpop.permute.xlu0 %1565  ;;  %v1816_v47 = vsel %vm1802_vm8, %v1783_v58, %v1408_v41  ;;  %v4289_v41 = vld [vmem:[#allocation64_spill] sm:$0xff]  ;;  %v4295_v58 = vld [vmem:[#allocation102_spill] sm:$0xff] }
 0x277   : > { %v1864_v52 = vsel %vm1835_vm9, %v1831_v18, %v1566_v59  ;;  %v1653_v11 = vsel %vm1637_vm3, %v1620_v7, %v4289_v41  ;;  %v4292_v18 = vld [vmem:[#allocation71_spill] sm:$0xff] }
 0x278   : > { %2465 = vmatprep.mubr.msk.f32.mxu1 %vm1873_vm10, %v1864_v52  ;;  %v1686_v43 = vsel %vm1670_vm4, %v1653_v11, %v4291_v28  ;;  %v1668_v59 = vsel %vm1637_vm3, %v1635_v32, %v4292_v18  ;;  %v4294_v52 = vld [vmem:[#allocation90_spill] sm:$0xff] }
 0x279   : > { %v1534_v3 = vpop.permute.xlu1 %1533  ;;  %v1719_v39 = vsel %vm1703_vm5, %v1686_v43, %v4293_v20  ;;  %v1701_v36 = vsel %vm1670_vm4, %v1668_v59, %v4294_v52 }
 0x27a   : > { %v1848_v54 = vsel %vm1835_vm9, %v1815_v35, %v1534_v3  ;;  %v1536_v60 = vpop.permute.xlu0 %1535 }
 0x27b   : > { %2441 = vmatprep.mubr.msk.f32.mxu0 %vm1873_vm10, %v1848_v54  ;;  %v1849_v57 = vsel %vm1835_vm9, %v1816_v47, %v1536_v60  ;;  %v1734_v54 = vsel %vm1703_vm5, %v1701_v36, %v4295_v58  ;;  %v1636_v47 = vsel %vm171_vm0, %v2523_v49, %v4296_v55 }
 0x27c   : > { %2442 = vmatmul.mubr.msk.f32.gmra.mxu0 %vm1873_vm10, %v1849_v57  ;;  %v1669_v10 = vsel %vm1637_vm3, %v1636_v47, %v4297_v27 }
 0x27d   : > { %v1186_v40 = vpop.permute.xlu1 %1185 }
 0x27e   : > { %v1156_v16 = vpop.permute.xlu0 %1155  ;;  %v1767_v60 = vsel %vm1736_vm6, %v1734_v54, %v1186_v40  ;;  %v4299_v40 = vld [vmem:[#allocation104_spill] sm:$0xff] }
 0x27f   : > { %v1752_v15 = vsel %vm1736_vm6, %v1719_v39, %v1156_v16  ;;  %v1702_v16 = vsel %vm1670_vm4, %v1669_v10, %v4298_v6 }
 0x281   : > { %v1568_v21 = vpop.permute.xlu1 %1567 }
 0x282   : > { %v1865_v12 = vsel %vm1835_vm9, %v1832_v53, %v1568_v21  ;;  %v1282_v31 = vpop.permute.xlu0 %1281  ;;  %v1735_v21 = vsel %vm1703_vm5, %v1702_v16, %v4299_v40 }
 0x283   : > { %2466 = vmatmul.mubr.msk.f32.gmra.mxu1 %vm1873_vm10, %v1865_v12  ;;  %v1784_v24 = vsel %vm1769_vm7, %v1751_v45, %v1282_v31 }
 0x285   : > { %v1188_v9 = vpop.permute.xlu1 %1187 }
 0x286   : > { %v1284_v25 = vpop.permute.xlu0 %1283  ;;  %v1768_v31 = vsel %vm1736_vm6, %v1735_v21, %v1188_v9 }
 0x287   : > { %v1785_v56 = vsel %vm1769_vm7, %v1752_v15, %v1284_v25 }
 0x289   : > { %v1314_v30 = vpop.permute.xlu1 %1313 }
 0x28a   : > { %v1410_v33 = vpop.permute.xlu0 %1409  ;;  %v1800_v23 = vsel %vm1769_vm7, %v1767_v60, %v1314_v30 }
 0x28b   : > { %v1817_v13 = vsel %vm1802_vm8, %v1784_v24, %v1410_v33 }
 0x28d   : > { %v1316_v1 = vpop.permute.xlu1 %1315 }
 0x28e   : > { %v1412_v0 = vpop.permute.xlu0 %1411  ;;  %v1801_v30 = vsel %vm1769_vm7, %v1768_v31, %v1316_v1 }
 0x28f   : > { %v1818_v5 = vsel %vm1802_vm8, %v1785_v56, %v1412_v0 }
 0x291   : > { %v1442_v62 = vpop.permute.xlu1 %1441 }
 0x292   : > { %v1538_v17 = vpop.permute.xlu0 %1537  ;;  %v1833_v19 = vsel %vm1802_vm8, %v1800_v23, %v1442_v62 }
 0x293   : > { %v1850_v2 = vsel %vm1835_vm9, %v1817_v13, %v1538_v17 }
 0x294   : > { %v2425_v35 = vpop.f32.mrf.mxu0  ;;  %2444 = vmatprep.mubr.msk.f32.mxu0 %vm1873_vm10, %v1850_v2 }
 0x295   : > { %v1444_v3 = vpop.permute.xlu1 %1443 }
 0x296   : > { %v1540_v14 = vpop.permute.xlu0 %1539  ;;  %v2040_v57 = vpop.f32.mrf.mxu0  ;;  %v1834_v33 = vsel %vm1802_vm8, %v1801_v30, %v1444_v3 }
 0x297   : > { %v1851_v42 = vsel %vm1835_vm9, %v1818_v5, %v1540_v14  ;;  %2199 = vxpose.xlu0.b32.start [1/16] (narrow) %v2040_v57, 8 }
 0x298   : > { %2445 = vmatmul.mubr.msk.f32.gmra.mxu0 %vm1873_vm10, %v1851_v42 }
 0x299   : > { %v1570_v53 = vpop.permute.xlu1 %1569 }
 0x29a   : > { %v1866_v12 = vsel %vm1835_vm9, %v1833_v19, %v1570_v53 }
 0x29b   : > { %v2449_v25 = vpop.f32.mrf.mxu1  ;;  %2468 = vmatprep.mubr.msk.f32.mxu1 %vm1873_vm10, %v1866_v12  ;;  %2200 = vxpose.xlu0.b32.cont [2/16] (narrow) %v2425_v35, 8 }
 0x29d   : > { %v2120_v34 = vpop.f32.mrf.mxu1  ;;  %v1572_v22 = vpop.permute.xlu1 %1571 }
 0x29e   : > { %v1867_v51 = vsel %vm1835_vm9, %v1834_v33, %v1572_v22  ;;  %2231 = vxpose.xlu1.b32.start [1/16] (narrow) %v2120_v34, 8 }
 0x29f   : > { %2469 = vmatmul.mubr.msk.f32.gmra.mxu1 %vm1873_vm10, %v1867_v51 }
 0x2a2   : > { %2232 = vxpose.xlu1.b32.cont [2/16] (narrow) %v2449_v25, 8 }
 0x2aa   : > { %v2267_v39 = vpop.permute.xlu1 %2266 }
 0x2b0   : > { %v2428_v8 = vpop.f32.mrf.mxu0 }
 0x2b2   : > { %v2050_v50 = vpop.f32.mrf.mxu0 }
 0x2b3   : > { %2201 = vxpose.xlu0.b32.cont [3/16] (narrow) %v2050_v50, 8 }
 0x2b7   : > { %v2452_v9 = vpop.f32.mrf.mxu1  ;;  %2202 = vxpose.xlu0.b32.cont [4/16] (narrow) %v2428_v8, 8 }
 0x2b9   : > { %v2130_v61 = vpop.f32.mrf.mxu1 }
 0x2ba   : > { %2233 = vxpose.xlu1.b32.cont [3/16] (narrow) %v2130_v61, 8 }
 0x2be   : > { %2234 = vxpose.xlu1.b32.cont [4/16] (narrow) %v2452_v9, 8 }
 0x2cc   : > { %v2431_v1 = vpop.f32.mrf.mxu0 }
 0x2ce   : > { %v2060_v29 = vpop.f32.mrf.mxu0 }
 0x2cf   : > { %2203 = vxpose.xlu0.b32.cont [5/16] (narrow) %v2060_v29, 8 }
 0x2d3   : > { %v2455_v0 = vpop.f32.mrf.mxu1  ;;  %2204 = vxpose.xlu0.b32.cont [6/16] (narrow) %v2431_v1, 8 }
 0x2d5   : > { %v2140_v48 = vpop.f32.mrf.mxu1 }
 0x2d6   : > { %2235 = vxpose.xlu1.b32.cont [5/16] (narrow) %v2140_v48, 8 }
 0x2da   : > { %2236 = vxpose.xlu1.b32.cont [6/16] (narrow) %v2455_v0, 8 }
 0x2e8   : > { %v2434_v37 = vpop.f32.mrf.mxu0 }
 0x2ea   : > { %v2070_v44 = vpop.f32.mrf.mxu0 }
 0x2eb   : > { %2205 = vxpose.xlu0.b32.cont [7/16] (narrow) %v2070_v44, 8 }
 0x2ef   : > { %v2458_v4 = vpop.f32.mrf.mxu1  ;;  %2206 = vxpose.xlu0.b32.cont [8/16] (narrow) %v2434_v37, 8 }
 0x2f1   : > { %v2150_v7 = vpop.f32.mrf.mxu1 }
 0x2f2   : > { %2237 = vxpose.xlu1.b32.cont [7/16] (narrow) %v2150_v7, 8 }
 0x2f6   : > { %2238 = vxpose.xlu1.b32.cont [8/16] (narrow) %v2458_v4, 8 }
 0x304   : > { %v2437_v46 = vpop.f32.mrf.mxu0 }
 0x306   : > { %v2080_v45 = vpop.f32.mrf.mxu0 }
 0x307   : > { %2207 = vxpose.xlu0.b32.cont [9/16] (narrow) %v2080_v45, 8 }
 0x30b   : > { %v2461_v62 = vpop.f32.mrf.mxu1  ;;  %2208 = vxpose.xlu0.b32.cont [10/16] (narrow) %v2437_v46, 8 }
 0x30d   : > { %v2160_v41 = vpop.f32.mrf.mxu1 }
 0x30e   : > { %2239 = vxpose.xlu1.b32.cont [9/16] (narrow) %v2160_v41, 8 }
 0x312   : > { %2240 = vxpose.xlu1.b32.cont [10/16] (narrow) %v2461_v62, 8 }
 0x320   : > { %v2440_v11 = vpop.f32.mrf.mxu0 }
 0x322   : > { %v2090_v24 = vpop.f32.mrf.mxu0 }
 0x323   : > { %2209 = vxpose.xlu0.b32.cont [11/16] (narrow) %v2090_v24, 8 }
 0x327   : > { %v2464_v26 = vpop.f32.mrf.mxu1  ;;  %2210 = vxpose.xlu0.b32.cont [12/16] (narrow) %v2440_v11, 8 }
 0x329   : > { %v2170_v38 = vpop.f32.mrf.mxu1 }
 0x32a   : > { %2241 = vxpose.xlu1.b32.cont [11/16] (narrow) %v2170_v38, 8 }
 0x32e   : > { %2242 = vxpose.xlu1.b32.cont [12/16] (narrow) %v2464_v26, 8 }
 0x33c   : > { %v2443_v32 = vpop.f32.mrf.mxu0 }
 0x33e   : > { %v2100_v28 = vpop.f32.mrf.mxu0 }
 0x33f   : > { %2211 = vxpose.xlu0.b32.cont [13/16] (narrow) %v2100_v28, 8 }
 0x343   : > { %v2467_v43 = vpop.f32.mrf.mxu1  ;;  %2212 = vxpose.xlu0.b32.cont [14/16] (narrow) %v2443_v32, 8 }
 0x345   : > { %v2180_v13 = vpop.f32.mrf.mxu1 }
 0x346   : > { %2243 = vxpose.xlu1.b32.cont [13/16] (narrow) %v2180_v13, 8 }
 0x34a   : > { %2244 = vxpose.xlu1.b32.cont [14/16] (narrow) %v2467_v43, 8 }
 0x358   : > { %v2446_v17 = vpop.f32.mrf.mxu0 }
 0x35a   : > { %v2110_v18 = vpop.f32.mrf.mxu0 }
 0x35b   : > { %2213 = vxpose.xlu0.b32.cont [15/16] (narrow) %v2110_v18, 8 }
 0x35f   : > { %v2470_v59 = vpop.f32.mrf.mxu1  ;;  %2214 = vxpose.xlu0.b32.end [16/16] (narrow) %v2446_v17, 8 }
 0x361   : > { %v2190_v20 = vpop.f32.mrf.mxu1 }
 0x362   : > { %2245 = vxpose.xlu1.b32.cont [15/16] (narrow) %v2190_v20, 8 }
 0x366   : > { %2246 = vxpose.xlu1.b32.end [16/16] (narrow) %v2470_v59, 8 }
 0x388   : > { %2500 = vset.pattern.permute.xlu0 %v2541_v63 }
 0x39f   : > { %v2215_v2 = vpop.trf.xlu0 }
 0x3a0   : > { %v2269_v52 = vadd.f32 %v2267_v39, %v2215_v2 }
 0x3a2   : > { %v2271_v36 = vmax.f32 %v2269_v52, 0.0 }
 0x3a4   : > { %2273 = vst [vmem:[%s170_s17] sm:$0xff] %v2271_v36 }
 0x3a6   : > { %v2247_v15 = vpop.trf.xlu1 }
 0x3a7   : > { %v2270_v35 = vadd.f32 %v2267_v39, %v2247_v15 }
 0x3a9   : > { %v2272_v3 = vmax.f32 %v2270_v35, 0.0 }
 0x3ab   : > { %2274 = vst [vmem:[%s170_s17 + $0x8] sm:$0xff] %v2272_v3 }
 0x3ac PF: > { %s13_s12 = sadd.s32 1, %s2530_s12  }
 0x3ad   : > { %p10_p4 = scmp.ge.s32.totalorder %s13_s12, 4  }
 0x3af   :  { %12 = sbr.rel (!%p10_p4) target bundleno = 1 (0x1), region = 64 }

</bundles_post_ra>
